<compile_context>
chip_gen: v6e
topology: v6e:2x2x1
jax: 0.10.0
libtpu: 0.0.40
codegen_flags: <defaults>
</compile_context>

<pallas_src>
import jax
import jax.numpy as jnp
from jax import lax
from jax.experimental import pallas as pl
from jax.experimental.pallas import tpu as pltpu


def _bottleneck_kernel(xb_ref, w1_ref, w2_ref, w3_ref, b1_ref, b2_ref, b3_ref,
                       out_ref):
    _, Hp, Wp, Cin = xb_ref.shape          # (1, Hb+2, W+2, Cin) band with halo
    Hb, W = Hp - 2, Wp - 2
    Cmid = w1_ref.shape[1]
    Cout = w3_ref.shape[1]

    xb = xb_ref[...].reshape(Hp, Wp, Cin)

    # ---- conv1 (1x1) + folded BN1 + ReLU: one (Hp*Wp, Cin) x (Cin, Cmid) MXU matmul.
    h1 = jnp.dot(xb.reshape(Hp * Wp, Cin), w1_ref[...],
                 preferred_element_type=jnp.float32) + b1_ref[...]
    h1 = jnp.maximum(h1, 0.0).reshape(Hp, Wp, Cmid)

    # conv2's zero padding: zero h1 only where the halo is a true image border
    # (interior band halo rows are real data and must keep their conv1 values).
    b_idx = pl.program_id(1)
    h_total = pl.num_programs(1) * Hb
    row = lax.broadcasted_iota(jnp.int32, (Hp, Wp, 1), 0) + b_idx * Hb
    col = lax.broadcasted_iota(jnp.int32, (Hp, Wp, 1), 1)
    valid = (col >= 1) & (col <= W) & (row >= 1) & (row <= h_total)
    h1 = jnp.where(valid, h1, 0.0).astype(w2_ref.dtype)

    # ---- conv2 (3x3, pad=1) as a single im2col matmul, K = 9*Cmid.
    taps = [h1[dy:dy + Hb, dx:dx + W, :].reshape(Hb * W, Cmid)
            for dy in range(3) for dx in range(3)]
    patches = jnp.concatenate(taps, axis=1)               # (Hb*W, 9*Cmid)
    h2 = jnp.dot(patches, w2_ref[...],
                 preferred_element_type=jnp.float32) + b2_ref[...]
    h2 = jnp.maximum(h2, 0.0).astype(w3_ref.dtype)

    # ---- conv3 (1x1, expansion) + folded BN3 + identity residual + ReLU.
    out = jnp.dot(h2, w3_ref[...],
                  preferred_element_type=jnp.float32) + b3_ref[...]
    res = xb[1:Hb + 1, 1:W + 1, :].reshape(Hb * W, Cin).astype(jnp.float32)
    out = jnp.maximum(out + res, 0.0)
    out_ref[...] = out.reshape(1, Hb, W, Cout).astype(out_ref.dtype)


def _fold_bn(gamma, beta, mean, var, eps=1e-5):
    scale = (gamma.astype(jnp.float32) / jnp.sqrt(var.astype(jnp.float32) + eps))
    bias = beta.astype(jnp.float32) - mean.astype(jnp.float32) * scale
    return scale.reshape(1, -1), bias.reshape(1, -1)


def bottleneck(x_nchw, params, *, band_rows=8, compute_dtype=jnp.float32):
    """Bottleneck forward (stride=1, downsampling=False).  x_nchw: (N, Cin, H, W)."""
    (w1, g1, be1, m1, v1,
     w2, g2, be2, m2, v2,
     w3, g3, be3, m3, v3) = params
    N, Cin, H, W = x_nchw.shape
    Cmid = w1.shape[0]
    Cout = w3.shape[0]
    assert Cin == Cout, "identity shortcut requires inplaces == places * expansion"

    # H-band size: a multiple of 8 that divides H (fallback: the full H).
    Hb = band_rows
    if H % Hb != 0 or (Hb % 8 != 0 and Hb != H):
        Hb = H
    nb = H // Hb
    Hp, Wp = Hb + 2, W + 2

    # NCHW -> NHWC once (in a full network keep activations NHWC to avoid this
    # per-block transpose), plus the spatial zero pad for the 3x3 conv.
    x_nhwc = jnp.transpose(x_nchw, (0, 2, 3, 1)).astype(jnp.float32)
    xpad = jnp.pad(x_nhwc, ((0, 0), (1, 1), (1, 1), (0, 0)))
    # Banded view with the 1-row halo duplicated per band: each grid step gets a
    # non-overlapping (Hb+2, W+2, Cin) block -> simple double-buffered DMA.
    x_bands = jnp.stack([xpad[:, b * Hb: b * Hb + Hp] for b in range(nb)], axis=1)
    x_bands = x_bands.reshape(N * nb, Hp, Wp, Cin).astype(compute_dtype)

    # Fold BN (inference stats) into the conv weights; keep only the bias.
    s1, b1 = _fold_bn(g1, be1, m1, v1)
    s2, b2 = _fold_bn(g2, be2, m2, v2)
    s3, b3 = _fold_bn(g3, be3, m3, v3)
    w1_t = (w1.reshape(Cmid, Cin).T.astype(jnp.float32) * s1).astype(compute_dtype)
    w2_t = (jnp.transpose(w2, (2, 3, 1, 0)).reshape(9 * Cmid, Cmid)
            .astype(jnp.float32) * s2).astype(compute_dtype)
    w3_t = (w3.reshape(Cout, Cmid).T.astype(jnp.float32) * s3).astype(compute_dtype)

    itm = jnp.dtype(compute_dtype).itemsize
    flops = 2 * N * H * W * (Cin * Cmid + 9 * Cmid * Cmid + Cmid * Cout)
    bytes_accessed = int(itm * (x_bands.size + w1_t.size + w2_t.size + w3_t.size)
                         + 4 * (b1.size + b2.size + b3.size + N * H * W * Cout))

    out = pl.pallas_call(
        _bottleneck_kernel,
        out_shape=jax.ShapeDtypeStruct((N * nb, Hb, W, Cout), jnp.float32),
        grid_spec=pltpu.PrefetchScalarGridSpec(
            num_scalar_prefetch=0,
            grid=(N, nb),
            in_specs=[
                pl.BlockSpec((1, Hp, Wp, Cin), lambda n, b: (n * nb + b, 0, 0, 0)),
                pl.BlockSpec((Cin, Cmid), lambda n, b: (0, 0)),
                pl.BlockSpec((9 * Cmid, Cmid), lambda n, b: (0, 0)),
                pl.BlockSpec((Cmid, Cout), lambda n, b: (0, 0)),
                pl.BlockSpec((1, Cmid), lambda n, b: (0, 0)),
                pl.BlockSpec((1, Cmid), lambda n, b: (0, 0)),
                pl.BlockSpec((1, Cout), lambda n, b: (0, 0)),
            ],
            out_specs=pl.BlockSpec((1, Hb, W, Cout),
                                   lambda n, b: (n * nb + b, 0, 0, 0)),
        ),
        compiler_params=pltpu.CompilerParams(
            dimension_semantics=("parallel", "parallel"),
            vmem_limit_bytes=32 * 1024 * 1024,
        ),
        cost_estimate=pl.CostEstimate(flops=flops, transcendentals=0,
                                      bytes_accessed=bytes_accessed),
    )(x_bands, w1_t, w2_t, w3_t, b1, b2, b3)

    out_nhwc = out.reshape(N, H, W, Cout)
    return jnp.transpose(out_nhwc, (0, 3, 1, 2))


def _reference(x_nchw, params):
    """Pure-JAX reference (eval-mode BN), for verification."""
    (w1, g1, be1, m1, v1,
     w2, g2, be2, m2, v2,
     w3, g3, be3, m3, v3) = params
    dn = ('NHWC', 'HWIO', 'NHWC')
    x = jnp.transpose(x_nchw, (0, 2, 3, 1)).astype(jnp.float32)

    def bn(y, g, b, m, v, eps=1e-5):
        return (y - m) / jnp.sqrt(v + eps) * g + b

    w1_h = jnp.transpose(w1, (2, 3, 1, 0))
    w2_h = jnp.transpose(w2, (2, 3, 1, 0))
    w3_h = jnp.transpose(w3, (2, 3, 1, 0))
    y = lax.conv_general_dilated(x, w1_h, (1, 1), 'VALID', dimension_numbers=dn)
    y = jax.nn.relu(bn(y, g1, be1, m1, v1))
    y = lax.conv_general_dilated(y, w2_h, (1, 1), 'SAME', dimension_numbers=dn)
    y = jax.nn.relu(bn(y, g2, be2, m2, v2))
    y = lax.conv_general_dilated(y, w3_h, (1, 1), 'VALID', dimension_numbers=dn)
    y = bn(y, g3, be3, m3, v3)
    y = jax.nn.relu(y + x)
    return jnp.transpose(y, (0, 3, 1, 2))


if __name__ == "__main__":
    # Bottleneck(inplaces=16, places=4, stride=1, downsampling=False, expansion=4)
    N, H, W = 2, 16, 16
    places, expansion = 4, 4
    inplaces = places * expansion          # identity shortcut needs Cin == Cout
    Cmid, Cout = places, places * expansion

    key = jax.random.PRNGKey(0)
    ks = jax.random.split(key, 16)

    x = jax.random.normal(ks[0], (N, inplaces, H, W), jnp.float32)

    w1 = 0.1 * jax.random.normal(ks[1], (Cmid, inplaces, 1, 1), jnp.float32)
    w2 = 0.1 * jax.random.normal(ks[2], (Cmid, Cmid, 3, 3), jnp.float32)
    w3 = 0.1 * jax.random.normal(ks[3], (Cout, Cmid, 1, 1), jnp.float32)

    g1 = 1.0 + 0.1 * jax.random.normal(ks[4], (Cmid,), jnp.float32)
    be1 = 0.1 * jax.random.normal(ks[5], (Cmid,), jnp.float32)
    m1 = 0.05 * jax.random.normal(ks[6], (Cmid,), jnp.float32)
    v1 = 1.0 + 0.1 * jax.random.uniform(ks[7], (Cmid,), jnp.float32)

    g2 = 1.0 + 0.1 * jax.random.normal(ks[8], (Cmid,), jnp.float32)
    be2 = 0.1 * jax.random.normal(ks[9], (Cmid,), jnp.float32)
    m2 = 0.05 * jax.random.normal(ks[10], (Cmid,), jnp.float32)
    v2 = 1.0 + 0.1 * jax.random.uniform(ks[11], (Cmid,), jnp.float32)

    g3 = 1.0 + 0.1 * jax.random.normal(ks[12], (Cout,), jnp.float32)
    be3 = 0.1 * jax.random.normal(ks[13], (Cout,), jnp.float32)
    m3 = 0.05 * jax.random.normal(ks[14], (Cout,), jnp.float32)
    v3 = 1.0 + 0.1 * jax.random.uniform(ks[15], (Cout,), jnp.float32)

    params = (w1, g1, be1, m1, v1, w2, g2, be2, m2, v2, w3, g3, be3, m3, v3)

    out = jax.block_until_ready(bottleneck(x, params, band_rows=8))
    ref = jax.block_until_ready(_reference(x, params))

    assert out.shape == (N, Cout, H, W)
    assert jnp.allclose(out, ref, rtol=1e-3, atol=1e-4), (
        "mismatch vs JAX reference: max abs err = %g"
        % float(jnp.max(jnp.abs(out - ref))))

    print("KERNEL_OK")
</pallas_src>

<mosaic_0001>
module attributes {stable_mosaic.version = 11 : i64} {
  func.func @_bottleneck_kernel(%arg0: i32, %arg1: i32, %arg2: memref<1x10x18x16xf32, #tpu.memory_space<vmem>>, %arg3: memref<16x4xf32, #tpu.memory_space<vmem>>, %arg4: memref<36x4xf32, #tpu.memory_space<vmem>>, %arg5: memref<4x16xf32, #tpu.memory_space<vmem>>, %arg6: memref<1x4xf32, #tpu.memory_space<vmem>>, %arg7: memref<1x4xf32, #tpu.memory_space<vmem>>, %arg8: memref<1x16xf32, #tpu.memory_space<vmem>>, %arg9: memref<1x8x16x16xf32, #tpu.memory_space<vmem>>) attributes {dimension_semantics = [#tpu.dimension_semantics<parallel>, #tpu.dimension_semantics<parallel>], iteration_bounds = array<i64: 2, 2>, scalar_prefetch = 0 : i64, scratch_operands = 0 : i64, tpu.core_type = #tpu.core_type<tc>, window_params = [{transform_indices = @transform_0, window_bounds = array<i64: 1, 10, 18, 16>}, {pipeline_mode = #tpu.pipeline_mode<synchronous>, transform_indices = @transform_1, window_bounds = array<i64: 16, 4>}, {pipeline_mode = #tpu.pipeline_mode<synchronous>, transform_indices = @transform_2, window_bounds = array<i64: 36, 4>}, {pipeline_mode = #tpu.pipeline_mode<synchronous>, transform_indices = @transform_3, window_bounds = array<i64: 4, 16>}, {pipeline_mode = #tpu.pipeline_mode<synchronous>, transform_indices = @transform_4, window_bounds = array<i64: 1, 4>}, {pipeline_mode = #tpu.pipeline_mode<synchronous>, transform_indices = @transform_5, window_bounds = array<i64: 1, 4>}, {pipeline_mode = #tpu.pipeline_mode<synchronous>, transform_indices = @transform_6, window_bounds = array<i64: 1, 16>}, {transform_indices = @transform_7, window_bounds = array<i64: 1, 8, 16, 16>}]} {
    %c0 = arith.constant 0 : index
    %c0_0 = arith.constant 0 : index
    %c0_1 = arith.constant 0 : index
    %c0_2 = arith.constant 0 : index
    %0 = vector.load %arg2[%c0, %c0_0, %c0_1, %c0_2] : memref<1x10x18x16xf32, #tpu.memory_space<vmem>>, vector<1x10x18x16xf32>
    %1 = vector.shape_cast %0 : vector<1x10x18x16xf32> to vector<10x18x16xf32>
    %2 = vector.shape_cast %1 : vector<10x18x16xf32> to vector<180x16xf32>
    %c0_3 = arith.constant 0 : index
    %c0_4 = arith.constant 0 : index
    %3 = vector.load %arg3[%c0_3, %c0_4] : memref<16x4xf32, #tpu.memory_space<vmem>>, vector<16x4xf32>
    %cst = arith.constant dense<0.000000e+00> : vector<180x4xf32>
    %4 = tpu.matmul %2, %3, %cst {dimension_numbers = #tpu.dot_dimension_numbers<[1], [0], [0], [1], [0, 0, 1, 1], [], []>} : vector<180x16xf32>, vector<16x4xf32>, vector<180x4xf32> -> vector<180x4xf32>
    %c0_5 = arith.constant 0 : index
    %c0_6 = arith.constant 0 : index
    %5 = vector.load %arg6[%c0_5, %c0_6] : memref<1x4xf32, #tpu.memory_space<vmem>>, vector<1x4xf32>
    %6 = vector.broadcast %5 : vector<1x4xf32> to vector<180x4xf32>
    %7 = arith.addf %4, %6 : vector<180x4xf32>
    %cst_7 = arith.constant 0.000000e+00 : f32
    %8 = vector.broadcast %cst_7 : f32 to vector<180x4xf32>
    %9 = arith.maximumf %7, %8 : vector<180x4xf32>
    %10 = vector.shape_cast %9 : vector<180x4xf32> to vector<10x18x4xf32>
    %11 = tpu.iota {dimensions = array<i32: 0>} : vector<10x18x1xi32>
    %c8_i32 = arith.constant 8 : i32
    %12 = arith.muli %arg1, %c8_i32 : i32
    %13 = vector.broadcast %12 : i32 to vector<10x18x1xi32>
    %14 = arith.addi %11, %13 : vector<10x18x1xi32>
    %15 = tpu.iota {dimensions = array<i32: 1>} : vector<10x18x1xi32>
    %c1_i32 = arith.constant 1 : i32
    %16 = vector.broadcast %c1_i32 : i32 to vector<10x18x1xi32>
    %17 = arith.cmpi sge, %15, %16 : vector<10x18x1xi32>
    %c16_i32 = arith.constant 16 : i32
    %18 = vector.broadcast %c16_i32 : i32 to vector<10x18x1xi32>
    %19 = arith.cmpi sle, %15, %18 : vector<10x18x1xi32>
    %20 = arith.andi %17, %19 : vector<10x18x1xi1>
    %c1_i32_8 = arith.constant 1 : i32
    %21 = vector.broadcast %c1_i32_8 : i32 to vector<10x18x1xi32>
    %22 = arith.cmpi sge, %14, %21 : vector<10x18x1xi32>
    %23 = arith.andi %20, %22 : vector<10x18x1xi1>
    %c16_i32_9 = arith.constant 16 : i32
    %24 = vector.broadcast %c16_i32_9 : i32 to vector<10x18x1xi32>
    %25 = arith.cmpi sle, %14, %24 : vector<10x18x1xi32>
    %26 = arith.andi %23, %25 : vector<10x18x1xi1>
    %cst_10 = arith.constant 0.000000e+00 : f32
    %27 = vector.shape_cast %26 : vector<10x18x1xi1> to vector<10x18x1xi1>
    %28 = vector.broadcast %27 : vector<10x18x1xi1> to vector<10x18x4xi1>
    %29 = vector.broadcast %cst_10 : f32 to vector<10x18x4xf32>
    %30 = arith.select %28, %10, %29 : vector<10x18x4xi1>, vector<10x18x4xf32>
    %31 = vector.extract_strided_slice %30 {offsets = [0, 0, 0], sizes = [8, 16, 4], strides = [1, 1, 1]} : vector<10x18x4xf32> to vector<8x16x4xf32>
    %32 = vector.shape_cast %31 : vector<8x16x4xf32> to vector<128x4xf32>
    %33 = vector.extract_strided_slice %30 {offsets = [0, 1, 0], sizes = [8, 16, 4], strides = [1, 1, 1]} : vector<10x18x4xf32> to vector<8x16x4xf32>
    %34 = vector.shape_cast %33 : vector<8x16x4xf32> to vector<128x4xf32>
    %35 = vector.extract_strided_slice %30 {offsets = [0, 2, 0], sizes = [8, 16, 4], strides = [1, 1, 1]} : vector<10x18x4xf32> to vector<8x16x4xf32>
    %36 = vector.shape_cast %35 : vector<8x16x4xf32> to vector<128x4xf32>
    %37 = vector.extract_strided_slice %30 {offsets = [1, 0, 0], sizes = [8, 16, 4], strides = [1, 1, 1]} : vector<10x18x4xf32> to vector<8x16x4xf32>
    %38 = vector.shape_cast %37 : vector<8x16x4xf32> to vector<128x4xf32>
    %39 = vector.extract_strided_slice %30 {offsets = [1, 1, 0], sizes = [8, 16, 4], strides = [1, 1, 1]} : vector<10x18x4xf32> to vector<8x16x4xf32>
    %40 = vector.shape_cast %39 : vector<8x16x4xf32> to vector<128x4xf32>
    %41 = vector.extract_strided_slice %30 {offsets = [1, 2, 0], sizes = [8, 16, 4], strides = [1, 1, 1]} : vector<10x18x4xf32> to vector<8x16x4xf32>
    %42 = vector.shape_cast %41 : vector<8x16x4xf32> to vector<128x4xf32>
    %43 = vector.extract_strided_slice %30 {offsets = [2, 0, 0], sizes = [8, 16, 4], strides = [1, 1, 1]} : vector<10x18x4xf32> to vector<8x16x4xf32>
    %44 = vector.shape_cast %43 : vector<8x16x4xf32> to vector<128x4xf32>
    %45 = vector.extract_strided_slice %30 {offsets = [2, 1, 0], sizes = [8, 16, 4], strides = [1, 1, 1]} : vector<10x18x4xf32> to vector<8x16x4xf32>
    %46 = vector.shape_cast %45 : vector<8x16x4xf32> to vector<128x4xf32>
    %47 = vector.extract_strided_slice %30 {offsets = [2, 2, 0], sizes = [8, 16, 4], strides = [1, 1, 1]} : vector<10x18x4xf32> to vector<8x16x4xf32>
    %48 = vector.shape_cast %47 : vector<8x16x4xf32> to vector<128x4xf32>
    %49 = tpu.concatenate %32, %34, %36, %38, %40, %42, %44, %46, %48 in 1 : vector<128x4xf32>, vector<128x4xf32>, vector<128x4xf32>, vector<128x4xf32>, vector<128x4xf32>, vector<128x4xf32>, vector<128x4xf32>, vector<128x4xf32>, vector<128x4xf32> -> vector<128x36xf32>
    %c0_11 = arith.constant 0 : index
    %c0_12 = arith.constant 0 : index
    %50 = vector.load %arg4[%c0_11, %c0_12] : memref<36x4xf32, #tpu.memory_space<vmem>>, vector<36x4xf32>
    %cst_13 = arith.constant dense<0.000000e+00> : vector<128x4xf32>
    %51 = tpu.matmul %49, %50, %cst_13 {dimension_numbers = #tpu.dot_dimension_numbers<[1], [0], [0], [1], [0, 0, 1, 1], [], []>} : vector<128x36xf32>, vector<36x4xf32>, vector<128x4xf32> -> vector<128x4xf32>
    %c0_14 = arith.constant 0 : index
    %c0_15 = arith.constant 0 : index
    %52 = vector.load %arg7[%c0_14, %c0_15] : memref<1x4xf32, #tpu.memory_space<vmem>>, vector<1x4xf32>
    %53 = vector.broadcast %52 : vector<1x4xf32> to vector<128x4xf32>
    %54 = arith.addf %51, %53 : vector<128x4xf32>
    %cst_16 = arith.constant 0.000000e+00 : f32
    %55 = vector.broadcast %cst_16 : f32 to vector<128x4xf32>
    %56 = arith.maximumf %54, %55 : vector<128x4xf32>
    %c0_17 = arith.constant 0 : index
    %c0_18 = arith.constant 0 : index
    %57 = vector.load %arg5[%c0_17, %c0_18] : memref<4x16xf32, #tpu.memory_space<vmem>>, vector<4x16xf32>
    %cst_19 = arith.constant dense<0.000000e+00> : vector<128x16xf32>
    %58 = tpu.matmul %56, %57, %cst_19 {dimension_numbers = #tpu.dot_dimension_numbers<[1], [0], [0], [1], [0, 0, 1, 1], [], []>} : vector<128x4xf32>, vector<4x16xf32>, vector<128x16xf32> -> vector<128x16xf32>
    %c0_20 = arith.constant 0 : index
    %c0_21 = arith.constant 0 : index
    %59 = vector.load %arg8[%c0_20, %c0_21] : memref<1x16xf32, #tpu.memory_space<vmem>>, vector<1x16xf32>
    %60 = vector.broadcast %59 : vector<1x16xf32> to vector<128x16xf32>
    %61 = arith.addf %58, %60 : vector<128x16xf32>
    %62 = vector.extract_strided_slice %1 {offsets = [1, 1, 0], sizes = [8, 16, 16], strides = [1, 1, 1]} : vector<10x18x16xf32> to vector<8x16x16xf32>
    %63 = vector.shape_cast %62 : vector<8x16x16xf32> to vector<128x16xf32>
    %64 = arith.addf %61, %63 : vector<128x16xf32>
    %cst_22 = arith.constant 0.000000e+00 : f32
    %65 = vector.broadcast %cst_22 : f32 to vector<128x16xf32>
    %66 = arith.maximumf %64, %65 : vector<128x16xf32>
    %67 = vector.shape_cast %66 : vector<128x16xf32> to vector<1x8x16x16xf32>
    %c0_23 = arith.constant 0 : index
    %c0_24 = arith.constant 0 : index
    %c0_25 = arith.constant 0 : index
    %c0_26 = arith.constant 0 : index
    %68 = vector.load %arg9[%c0_23, %c0_24, %c0_25, %c0_26] : memref<1x8x16x16xf32, #tpu.memory_space<vmem>>, vector<1x8x16x16xf32>
    tpu.vector_store %arg9[%c0_23, %c0_24, %c0_25, %c0_26], %67 {strides = array<i32>} : memref<1x8x16x16xf32, #tpu.memory_space<vmem>>, vector<1x8x16x16xf32>,
    return
  }
  func.func @transform_0(%arg0: i32, %arg1: i32) -> (i32, i32, i32, i32) {
    %c2_i32 = arith.constant 2 : i32
    %0 = arith.muli %arg0, %c2_i32 : i32
    %1 = arith.addi %0, %arg1 : i32
    %c0_i32 = arith.constant 0 : i32
    %c0_i32_0 = arith.constant 0 : i32
    %c0_i32_1 = arith.constant 0 : i32
    %c0_i32_2 = arith.constant 0 : i32
    return %1, %c0_i32, %c0_i32_0, %c0_i32_1 : i32, i32, i32, i32
  }
  func.func @transform_1(%arg0: i32, %arg1: i32) -> (i32, i32) {
    %c0_i32 = arith.constant 0 : i32
    %c0_i32_0 = arith.constant 0 : i32
    %c0_i32_1 = arith.constant 0 : i32
    return %c0_i32, %c0_i32_0 : i32, i32
  }
  func.func @transform_2(%arg0: i32, %arg1: i32) -> (i32, i32) {
    %c0_i32 = arith.constant 0 : i32
    %c0_i32_0 = arith.constant 0 : i32
    %c0_i32_1 = arith.constant 0 : i32
    return %c0_i32, %c0_i32_0 : i32, i32
  }
  func.func @transform_3(%arg0: i32, %arg1: i32) -> (i32, i32) {
    %c0_i32 = arith.constant 0 : i32
    %c0_i32_0 = arith.constant 0 : i32
    %c0_i32_1 = arith.constant 0 : i32
    return %c0_i32, %c0_i32_0 : i32, i32
  }
  func.func @transform_4(%arg0: i32, %arg1: i32) -> (i32, i32) {
    %c0_i32 = arith.constant 0 : i32
    %c0_i32_0 = arith.constant 0 : i32
    %c0_i32_1 = arith.constant 0 : i32
    return %c0_i32, %c0_i32_0 : i32, i32
  }
  func.func @transform_5(%arg0: i32, %arg1: i32) -> (i32, i32) {
    %c0_i32 = arith.constant 0 : i32
    %c0_i32_0 = arith.constant 0 : i32
    %c0_i32_1 = arith.constant 0 : i32
    return %c0_i32, %c0_i32_0 : i32, i32
  }
  func.func @transform_6(%arg0: i32, %arg1: i32) -> (i32, i32) {
    %c0_i32 = arith.constant 0 : i32
    %c0_i32_0 = arith.constant 0 : i32
    %c0_i32_1 = arith.constant 0 : i32
    return %c0_i32, %c0_i32_0 : i32, i32
  }
  func.func @transform_7(%arg0: i32, %arg1: i32) -> (i32, i32, i32, i32) {
    %c2_i32 = arith.constant 2 : i32
    %0 = arith.muli %arg0, %c2_i32 : i32
    %1 = arith.addi %0, %arg1 : i32
    %c0_i32 = arith.constant 0 : i32
    %c0_i32_0 = arith.constant 0 : i32
    %c0_i32_1 = arith.constant 0 : i32
    %c0_i32_2 = arith.constant 0 : i32
    return %1, %c0_i32, %c0_i32_0, %c0_i32_1 : i32, i32, i32, i32
  }
}

</mosaic_0001>

<bundles_post_ra>
// kernel: tpu_custom_call.1
= control target key start
LH: loop header
LB: loop body
LE: loop exit
PB: predicated region body
PF: predicated region fallthrough
CT: control target
= control target key end

     0   :  { %s5888_s0 = inlined_call_operand.vmem [shape: f32[4,10,18,16], index: 0, kind: input, shape index: {}]   ;;  %s5889_s1 = inlined_call_operand.vmem [shape: f32[16,4], index: 1, kind: input, shape index: {}]   ;;  %s5890_s2 = inlined_call_operand.vmem [shape: f32[36,4], index: 2, kind: input, shape index: {}]   ;;  %s5891_s3 = inlined_call_operand.vmem [shape: f32[4,16], index: 3, kind: input, shape index: {}]   ;;  %s5892_s4 = inlined_call_operand.vmem [shape: f32[1,4], index: 4, kind: input, shape index: {}]   ;;  %s5893_s5 = inlined_call_operand.vmem [shape: f32[1,4], index: 5, kind: input, shape index: {}]   ;;  %s5894_s6 = inlined_call_operand.vmem [shape: f32[1,16], index: 6, kind: input, shape index: {}]   ;;  %s5895_s7 = inlined_call_operand.hbm [shape: f32[4,8,16,16], index: 7, kind: output, shape index: {}]  }
   0x1   :  { %5904 = sst [smem:[#allocation6_spill]] %s5888_s0 }
   0x2   :  { %12 = vsyncpa [#allocation3], 0 }
   0x3   :  { %14 = vsyncpa [#allocation3 + $0x1], 0  ;;  %s4300_s24 = smov 0   ;;  %s4302_s25 = smov 0  }
   0x4   :  { %s4304_s26 = smov 0   ;;  %s4306_s27 = smov 0  }
   0x5   :  { %s4308_s28 = smov 0   ;;  %s4310_s29 = smov 0  }
   0x6   :  { %s4312_s30 = smov 0   ;;  %s4314_s8 = smov 0  }
   0x7 LB: > { %s3735_s9 = sadd.s32 4294967295, %s4245_s8   ;;  %s29_s10 = sadd.s32 1, %s4237_s29  ;;  %s4245_s8 = sphi %s4314_s8, %s20_s8   ;;  %s4241_s30 = sphi %s4312_s30, %s5946_s30   ;;  %s4237_s29 = sphi %s4310_s29, %s5945_s29   ;;  %s4233_s28 = sphi %s4308_s28, %s5944_s28   ;;  %s4229_s27 = sphi %s4306_s27, %s5943_s27   ;;  %s4225_s26 = sphi %s4304_s26, %s5942_s26   ;;  %s4221_s25 = sphi %s4302_s25, %s5941_s25   ;;  %s4217_s24 = sphi %s4300_s24, %s5940_s24  }
   0x8   : > { %s32_s11 = sadd.s32 1, %s4241_s30  ;;  %p30_p0 = scmp.ge.s32.totalorder %s29_s10, 2 }
   0x9   : > { %s3739_s12 = sshll.u32 %s4241_s30, 1  ;;  %s3736_s13 = sadd.s32 4294967294, %s4245_s8  }
   0xa   : > { %s193_s14 = sadd.s32 %s4237_s29, %s3739_s12  ;;  %s5948_s10 = smov (%p30_p0, %s29_s10), 0 }
   0xb   : > { %s5950_s11 = smov (!%p30_p0, %s32_s11), %s4241_s30  ;;  %p209_p1 = scmp.ne.s32.totalorder %s4225_s26, %s4221_s25 }
   0xc   : > { %p210_p2 = scmp.eq.s32.totalorder %s3735_s9, 3  ;;  %p34_p3 = scmp.ge.s32.totalorder %s5950_s11, 2 }
   0xd   : > { %p215_p4 = scmp.ne.s32.totalorder %s4221_s25, %s4217_s24  ;;  %p216_p6 = scmp.eq.s32.totalorder %s3736_s13, 3 }
   0xe   : > { %p4353_p5 = por %p210_p2, %p209_p1  ;;  %s5952_s11 = smov (%p34_p3, %s5950_s11), 0 }
   0xf   : > { %p4359_p7 = por %p216_p6, %p215_p4  ;;  %p3743_p8 = scmp.ge.s32.totalorder %s4245_s8, 1 }
  0x10   : > { %s3740_s17 = sshll.u32 %s5952_s11, 1  ;;  %p264_p9 = scmp.lt.s32.totalorder %s4245_s8, 5 }
  0x11   : > { %s195_s18 = sadd.s32 %s3740_s17, %s5948_s10  ;;  %s199_s19 = sadd.s32 1, %s4225_s26 }
  0x12   : > { %s196_s20 = ssub.s32 %s193_s14, %s195_s18  ;;  %p265_p10 = pnand %p3743_p8, %p264_p9 }
  0x13   : > { %p197_p11 = scmp.eq.s32.totalorder %s196_s20, 0 }
  0x14   : > { %268 = sbr.rel (%p265_p10) target bundleno = 1045 (0x415), region = 48 }
  0x15   : > { %s4369_s21 = scalar_select %p197_p11, %s4225_s26, %s199_s19  }
  0x19   : > { %v780_v0 = vld [vmem:[%s5889_s1 + $0x8] sm:$0xff]  ;;  %s3745_s9 = sshll.u32 %s4233_s28, 1  ;;  %v373_v1 = vlaneseq  ;;  %v4247_v2 = vmov 0.0   ;;  %v779_v3 = vld [vmem:[%s5889_s1] sm:$0xff]  ;;  %v4248_v4 = vmov 1983009808  }
  0x1a   : > { %4013 = vmatprep.subr.mxu1 %v4247_v2  ;;  %3880 = vmatprep.subr.mxu0 %v4247_v2  ;;  %s4381_s14 = sadd.s32 %s4229_s27, %s3745_s9  ;;  %v371_v5 = vunpack.c.l.s4 %v4248_v4  ;;  %vm4249_vm0 = vmmov 0   ;;  %s5907_s0 = sld [smem:[#allocation6_spill]]  ;;  %vm1170_vm1 = vcmask 130048   ;;  %vm2483_vm15 = vcmask 1046528  }
  0x1b   : > { %4015 = vmatpush3.msra.mxu1 %v780_v0  ;;  %3881 = vmatpush3.msra.mxu0 %v780_v0  ;;  %p300_p12 = scmp.lt.s32.totalorder %s4381_s14, 3  ;;  %v4384_v6 = vshrl.u32 %v373_v1, 7  ;;  %s3773_s9 = sshll.u32 %s4229_s27, 3 }
  0x1c   : > { %4014 = vmatprep.subr.mxu1 %v4247_v2  ;;  %3944 = vmatprep.mubr.msk.f32.mxu1 %vm4249_vm0, %v4247_v2  ;;  %v372_v7 = vunpack.c.0.s8 %v371_v5  ;;  %s4250_s27 = smov 24   ;;  %s4251_s12 = smov 28  }
  0x1d   : > { %4016 = vmatpush3.msra.mxu1 %v779_v3  ;;  %3882 = vmatprep.subr.mxu0 %v4247_v2  ;;  %s301_s28 = scalar_select %p300_p12, %s4381_s14, 3  ;;  %vm5902_vm2 = vcmp.ge.s32.totalorder %v4384_v6, 1 }
  0x1e   : > { %3883 = vmatpush3.msra.mxu0 %v779_v3  ;;  %3884 = vmatprep.mubr.msk.f32.mxu0 %vm4249_vm0, %v4247_v2  ;;  %v4394_v8 = vsub.s32 %v372_v7, %v4384_v6  ;;  %s4252_s13 = smov 4   ;;  %s4255_s18 = smov 16  }
  0x1f   : > { %s4017_s17 = smul.u32 240, %s301_s28  ;;  %s5897_s28 = smov 8  }
  0x20   : > { %s5899_s19 = smov 20   ;;  %s4257_s22 = smov 32  }
  0x21   : > { %s4399_s20 = scalar_lea.vmem %s5907_s0, %s4017_s17  ;;  %s4254_s17 = smov 12  }
  0x22   : > { %v4145_v9 = vld.sshfl [vmem:[%s4399_s20 + $0xd0] sm:$0x3 pattern:$0x76325410]  ;;  %v336_v10 = vld [vmem:[%s4399_s20 + $0xd8] sm:$0xff]  ;;  %v309_v11 = vld [vmem:[%s4399_s20] sm:$0xff] }
  0x23   : > { %v738_v12 = vcombine.high %v336_v10, %v336_v10  ;;  %v745_v13 = vrot.slane %v336_v10, %v4394_v8  ;;  %v369_v14 = vcombine.high %v309_v11, %v309_v11  ;;  %v337_v15 = vld [vmem:[%s4399_s20 + $0xe0] sm:$0xff]  ;;  %v310_v16 = vld [vmem:[%s4399_s20 + $0x8] sm:$0xff]  ;;  %v376_v17 = vrot.slane %v309_v11, %v4394_v8  ;;  %v312_v42 = vld [vmem:[%s4399_s20 + $0x18] sm:$0xff]  ;;  %s4258_s23 = smov [#allocation2]  }
  0x24   : > { %v755_v18 = vcombine.high %v337_v15, %v337_v15  ;;  %v762_v19 = vrot.slane %v337_v15, %v4394_v8  ;;  %v386_v20 = vcombine.high %v310_v16, %v310_v16  ;;  %v393_v28 = vrot.slane %v310_v16, %v4394_v8  ;;  %v3748_v37 = vld.sshfl [vmem:[%s4399_s20 + $0xe8] sm:$0x3 pattern:$0x76325410]  ;;  %v313_v47 = vld [vmem:[%s4399_s20 + $0x20] sm:$0xff]  ;;  %v315_v58 = vld [vmem:[%s4399_s20 + $0x30] sm:$0xff] }
  0x25   : > { %v752_v21 = vrot.slane %v738_v12, %v4394_v8  ;;  %v753_v22 = vcombine.high %v745_v13, %v745_v13  ;;  %v1128_v23 = vcombine.low %v4145_v9, %v745_v13  ;;  %v383_v24 = vrot.slane %v369_v14, %v4394_v8  ;;  %v3747_v52 = vld.sshfl [vmem:[%s4399_s20 + $0x10] sm:$0x3 pattern:$0x76325410]  ;;  %v316_v9 = vld [vmem:[%s4399_s20 + $0x38] sm:$0xff] }
  0x26   : > { %v384_v25 = vcombine.high %v376_v17, %v376_v17  ;;  %v769_v26 = vrot.slane %v755_v18, %v4394_v8  ;;  %v770_v27 = vcombine.high %v762_v19, %v762_v19  ;;  %v400_v35 = vrot.slane %v386_v20, %v4394_v8  ;;  %v4146_v57 = vld.sshfl [vmem:[%s4399_s20 + $0x28] sm:$0x3 pattern:$0x76325410] }
  0x27   : > { %v1129_v29 = vcombine.low %v753_v22, %v752_v21  ;;  %v1136_v30 = vrot.slane %v1128_v23, %v4394_v8  ;;  %v385_v31 = vcombine.high %v383_v24, %v383_v24  ;;  %v754_v32 = vcombine.high %v752_v21, %v752_v21 }
  0x28   : > { %v788_v33 = vcombine.low %v376_v17, %v384_v25  ;;  %v1146_v34 = vcombine.low %v770_v27, %v769_v26  ;;  %v401_v36 = vcombine.high %v393_v28, %v393_v28  ;;  %v771_v41 = vcombine.high %v769_v26, %v769_v26  ;;  %v4147_v26 = vld.sshfl [vmem:[%s4399_s20 + $0x40] sm:$0x3 pattern:$0x76325410]  ;;  %v318_v27 = vld [vmem:[%s4399_s20 + $0x48] sm:$0xff] }
  0x29   : > { %v1143_v38 = vrot.slane %v1129_v29, %v4394_v8  ;;  %v789_v39 = vcombine.low %v383_v24, %v385_v31  ;;  %v1145_v40 = vcombine.low %v754_v32, %v762_v19  ;;  %v402_v45 = vcombine.high %v400_v35, %v400_v35 }
  0x2a   : > { %v796_v43 = vrot.slane %v788_v33, %v4394_v8  ;;  %v1160_v44 = vrot.slane %v1146_v34, %v4394_v8  ;;  %v805_v46 = vcombine.low %v393_v28, %v401_v36  ;;  %v1162_v51 = vcombine.low %v771_v41, %v3748_v37 }
  0x2b   : > { %v1144_v48 = vcombine.low %v1136_v30, %v1143_v38  ;;  %v803_v49 = vrot.slane %v789_v39, %v4394_v8  ;;  %v1153_v50 = vrot.slane %v1145_v40, %v4394_v8  ;;  %v806_v53 = vcombine.low %v400_v35, %v402_v45  ;;  %v319_v39 = vld [vmem:[%s4399_s20 + $0x50] sm:$0xff] }
  0x2c   : > { %v813_v54 = vrot.slane %v805_v46, %v4394_v8  ;;  %v410_v55 = vcombine.high %v312_v42, %v312_v42  ;;  %v417_v56 = vrot.slane %v312_v42, %v4394_v8  ;;  %v1169_v61 = vrot.slane %v1162_v51, %v4394_v8 }
  0x2d   : > { %3945 = vmatmul.mubr.msk.f32.vlgmr.msra.gmra.mxu1 %vm1170_vm1, %v1144_v48  ;;  %v804_v59 = vcombine.low %v796_v43, %v803_v49  ;;  %v1161_v60 = vcombine.low %v1153_v50, %v1160_v44  ;;  %v427_v62 = vcombine.high %v313_v47, %v313_v47  ;;  %v820_v63 = vrot.slane %v806_v53, %v4394_v8  ;;  %v321_v43 = vld [vmem:[%s4399_s20 + $0x60] sm:$0xff] }
  0x2e   : > { %3947 = vmatprep.mubr.msk.f32.mxu1 %vm4249_vm0, %v4247_v2  ;;  %v424_v0 = vrot.slane %v410_v55, %v4394_v8  ;;  %v425_v1 = vcombine.high %v417_v56, %v417_v56  ;;  %v822_v3 = vcombine.low %v3747_v52, %v417_v56  ;;  %v434_v4 = vrot.slane %v313_v47, %v4394_v8  ;;  %v4148_v55 = vld.sshfl [vmem:[%s4399_s20 + $0x58] sm:$0x3 pattern:$0x76325410] }
  0x2f   : > { %3885 = vmatmul.mubr.msk.f32.vlgmr.msra.gmra.mxu0 %vm1170_vm1, %v804_v59  ;;  %v441_v5 = vrot.slane %v427_v62, %v4394_v8  ;;  %v458_v7 = vrot.slane %v315_v58, %v4394_v8  ;;  %v821_v10 = vcombine.low %v813_v54, %v820_v63  ;;  %v451_v17 = vcombine.high %v315_v58, %v315_v58 }
  0x30   : > { %3887 = vmatprep.mubr.msk.f32.mxu0 %vm4249_vm0, %v4247_v2  ;;  %v823_v11 = vcombine.low %v425_v1, %v424_v0  ;;  %v830_v12 = vrot.slane %v822_v3, %v4394_v8  ;;  %v426_v13 = vcombine.high %v424_v0, %v424_v0  ;;  %v442_v14 = vcombine.high %v434_v4, %v434_v4 }
  0x31   : > { %3948 = vmatmul.mubr.msk.f32.gmra.mxu1 %vm1170_vm1, %v1161_v60  ;;  %v443_v15 = vcombine.high %v441_v5, %v441_v5  ;;  %v466_v16 = vcombine.high %v458_v7, %v458_v7  ;;  %v475_v20 = vrot.slane %v316_v9, %v4394_v8  ;;  %v468_v21 = vcombine.high %v316_v9, %v316_v9 }
  0x32   : > { %3950 = vmatprep.mubr.msk.f32.mxu1 %vm4249_vm0, %v4247_v2  ;;  %v837_v18 = vrot.slane %v823_v11, %v4394_v8  ;;  %v839_v19 = vcombine.low %v426_v13, %v434_v4  ;;  %v840_v22 = vcombine.low %v442_v14, %v441_v5  ;;  %v465_v25 = vrot.slane %v451_v17, %v4394_v8 }
  0x33   : > { %3888 = vmatmul.mubr.msk.f32.gmra.mxu0 %vm1170_vm1, %v821_v10  ;;  %v856_v23 = vcombine.low %v443_v15, %v4146_v57  ;;  %v857_v24 = vcombine.low %v458_v7, %v466_v16  ;;  %v483_v30 = vcombine.high %v475_v20, %v475_v20  ;;  %v482_v31 = vrot.slane %v468_v21, %v4394_v8  ;;  %v322_v57 = vld [vmem:[%s4399_s20 + $0x68] sm:$0xff]  ;;  %v324_v16 = vld [vmem:[%s4399_s20 + $0x78] sm:$0xff] }
  0x34   : > { %3890 = vmatprep.mubr.msk.f32.mxu0 %vm4249_vm0, %v4247_v2  ;;  %v838_v28 = vcombine.low %v830_v12, %v837_v18  ;;  %v847_v29 = vrot.slane %v839_v19, %v4394_v8  ;;  %v854_v32 = vrot.slane %v840_v22, %v4394_v8  ;;  %v467_v35 = vcombine.high %v465_v25, %v465_v25 }
  0x35   : > { %3951 = vmatmul.mubr.msk.f32.gmra.mxu1 %vm1170_vm1, %v1169_v61  ;;  %v864_v33 = vrot.slane %v856_v23, %v4394_v8  ;;  %v871_v34 = vrot.slane %v857_v24, %v4394_v8  ;;  %v874_v36 = vcombine.low %v475_v20, %v483_v30  ;;  %v484_v37 = vcombine.high %v482_v31, %v482_v31  ;;  %v4149_v23 = vld.sshfl [vmem:[%s4399_s20 + $0x70] sm:$0x3 pattern:$0x76325410] }
  0x36   : > { %v499_v38 = vrot.slane %v318_v27, %v4394_v8  ;;  %v855_v40 = vcombine.low %v847_v29, %v854_v32  ;;  %v873_v41 = vcombine.low %v465_v25, %v467_v35  ;;  %v492_v42 = vcombine.high %v318_v27, %v318_v27  ;;  %v325_v27 = vld [vmem:[%s4399_s20 + $0x80] sm:$0xff] }
  0x37   : > { %3891 = vmatmul.mubr.msk.f32.gmra.mxu0 %vm1170_vm1, %v838_v28  ;;  %v872_v44 = vcombine.low %v864_v33, %v871_v34  ;;  %v890_v45 = vcombine.low %v482_v31, %v484_v37  ;;  %v509_v47 = vcombine.high %v319_v39, %v319_v39  ;;  %v888_v48 = vrot.slane %v874_v36, %v4394_v8  ;;  %v327_v37 = vld [vmem:[%s4399_s20 + $0x90] sm:$0xff] }
  0x38   : > { %3893 = vmatprep.mubr.msk.f32.mxu0 %vm4249_vm0, %v4247_v2  ;;  %v506_v46 = vrot.slane %v492_v42, %v4394_v8  ;;  %v891_v49 = vcombine.low %v4147_v26, %v499_v38  ;;  %v507_v50 = vcombine.high %v499_v38, %v499_v38  ;;  %v533_v51 = vcombine.high %v321_v43, %v321_v43 }
  0x39   : > { %v881_v52 = vrot.slane %v873_v41, %v4394_v8  ;;  %v516_v54 = vrot.slane %v319_v39, %v4394_v8  ;;  %v523_v56 = vrot.slane %v509_v47, %v4394_v8  ;;  %v898_v58 = vrot.slane %v890_v45, %v4394_v8 }
  0x3a   : > { %v508_v53 = vcombine.high %v506_v46, %v506_v46  ;;  %v540_v59 = vrot.slane %v321_v43, %v4394_v8  ;;  %v547_v60 = vrot.slane %v533_v51, %v4394_v8  ;;  %v550_v63 = vcombine.high %v322_v57, %v322_v57  ;;  %v4150_v43 = vld.sshfl [vmem:[%s4399_s20 + $0x88] sm:$0x3 pattern:$0x76325410] }
  0x3b   : > { %3894 = vmatmul.mubr.msk.f32.gmra.mxu0 %vm1170_vm1, %v855_v40  ;;  %v524_v61 = vcombine.high %v516_v54, %v516_v54  ;;  %v525_v62 = vcombine.high %v523_v56, %v523_v56  ;;  %v889_v0 = vcombine.low %v881_v52, %v888_v48  ;;  %v905_v1 = vrot.slane %v891_v49, %v4394_v8  ;;  %v328_v49 = vld [vmem:[%s4399_s20 + $0x98] sm:$0xff] }
  0x3c   : > { %3896 = vmatprep.mubr.msk.f32.mxu0 %vm4249_vm0, %v4247_v2  ;;  %v907_v3 = vcombine.low %v507_v50, %v506_v46  ;;  %v908_v4 = vcombine.low %v508_v53, %v516_v54  ;;  %v548_v5 = vcombine.high %v540_v59, %v540_v59  ;;  %v549_v7 = vcombine.high %v547_v60, %v547_v60 }
  0x3d   : > { %v924_v9 = vcombine.low %v524_v61, %v523_v56  ;;  %v925_v10 = vcombine.low %v525_v62, %v4148_v55  ;;  %v557_v11 = vrot.slane %v322_v57, %v4394_v8  ;;  %v564_v12 = vrot.slane %v550_v63, %v4394_v8 }
  0x3e   : > { %v906_v13 = vcombine.low %v898_v58, %v905_v1  ;;  %v915_v14 = vrot.slane %v907_v3, %v4394_v8  ;;  %v922_v15 = vrot.slane %v908_v4, %v4394_v8  ;;  %v941_v17 = vcombine.low %v540_v59, %v548_v5  ;;  %v4151_v3 = vld.sshfl [vmem:[%s4399_s20 + $0xa0] sm:$0x3 pattern:$0x76325410] }
  0x3f   : > { %3897 = vmatmul.mubr.msk.f32.gmra.mxu0 %vm1170_vm1, %v872_v44  ;;  %v942_v18 = vcombine.low %v547_v60, %v549_v7  ;;  %v932_v19 = vrot.slane %v924_v9, %v4394_v8  ;;  %v939_v20 = vrot.slane %v925_v10, %v4394_v8  ;;  %v565_v21 = vcombine.high %v557_v11, %v557_v11  ;;  %v330_v60 = vld [vmem:[%s4399_s20 + $0xa8] sm:$0xff]  ;;  %v331_v10 = vld [vmem:[%s4399_s20 + $0xb0] sm:$0xff] }
  0x40   : > { %3899 = vmatprep.mubr.msk.f32.mxu0 %vm4249_vm0, %v4247_v2  ;;  %v566_v22 = vcombine.high %v564_v12, %v564_v12  ;;  %v923_v24 = vcombine.low %v915_v14, %v922_v15  ;;  %v574_v25 = vcombine.high %v324_v16, %v324_v16  ;;  %v581_v26 = vrot.slane %v324_v16, %v4394_v8 }
  0x41   : > { %v949_v28 = vrot.slane %v941_v17, %v4394_v8  ;;  %v956_v29 = vrot.slane %v942_v18, %v4394_v8  ;;  %v940_v30 = vcombine.low %v932_v19, %v939_v20  ;;  %v958_v31 = vcombine.low %v557_v11, %v565_v21  ;;  %v333_v20 = vld [vmem:[%s4399_s20 + $0xc0] sm:$0xff] }
  0x42   : > { %v959_v32 = vcombine.low %v564_v12, %v566_v22  ;;  %v588_v33 = vrot.slane %v574_v25, %v4394_v8  ;;  %v589_v34 = vcombine.high %v581_v26, %v581_v26  ;;  %v591_v35 = vcombine.high %v325_v27, %v325_v27 }
  0x43   : > { %3900 = vmatmul.mubr.msk.f32.gmra.mxu0 %vm1170_vm1, %v889_v0  ;;  %v598_v36 = vrot.slane %v325_v27, %v4394_v8  ;;  %v957_v38 = vcombine.low %v949_v28, %v956_v29  ;;  %v975_v39 = vcombine.low %v4149_v23, %v581_v26  ;;  %v966_v40 = vrot.slane %v958_v31, %v4394_v8  ;;  %v4152_v29 = vld.sshfl [vmem:[%s4399_s20 + $0xb8] sm:$0x3 pattern:$0x76325410] }
  0x44   : > { %3902 = vmatprep.mubr.msk.f32.mxu0 %vm4249_vm0, %v4247_v2  ;;  %v973_v41 = vrot.slane %v959_v32, %v4394_v8  ;;  %v590_v42 = vcombine.high %v588_v33, %v588_v33  ;;  %v615_v44 = vcombine.high %v327_v37, %v327_v37  ;;  %v976_v45 = vcombine.low %v589_v34, %v588_v33  ;;  %v334_v32 = vld [vmem:[%s4399_s20 + $0xc8] sm:$0xff] }
  0x45   : > { %v605_v46 = vrot.slane %v591_v35, %v4394_v8  ;;  %v606_v47 = vcombine.high %v598_v36, %v598_v36  ;;  %v622_v48 = vrot.slane %v327_v37, %v4394_v8  ;;  %v983_v50 = vrot.slane %v975_v39, %v4394_v8 }
  0x46   : > { %v632_v51 = vcombine.high %v328_v49, %v328_v49  ;;  %v992_v52 = vcombine.low %v590_v42, %v598_v36  ;;  %v629_v54 = vrot.slane %v615_v44, %v4394_v8  ;;  %v639_v55 = vrot.slane %v328_v49, %v4394_v8 }
  0x47   : > { %3903 = vmatmul.mubr.msk.f32.gmra.mxu0 %vm1170_vm1, %v906_v13  ;;  %v607_v53 = vcombine.high %v605_v46, %v605_v46  ;;  %v974_v56 = vcombine.low %v966_v40, %v973_v41  ;;  %v990_v57 = vrot.slane %v976_v45, %v4394_v8  ;;  %v993_v58 = vcombine.low %v606_v47, %v605_v46 }
  0x48   : > { %3905 = vmatprep.mubr.msk.f32.mxu0 %vm4249_vm0, %v4247_v2  ;;  %v630_v59 = vcombine.high %v622_v48, %v622_v48  ;;  %v646_v61 = vrot.slane %v632_v51, %v4394_v8  ;;  %v1000_v62 = vrot.slane %v992_v52, %v4394_v8  ;;  %v631_v0 = vcombine.high %v629_v54, %v629_v54 }
  0x49   : > { %v1009_v63 = vcombine.low %v607_v53, %v4150_v43  ;;  %v647_v1 = vcombine.high %v639_v55, %v639_v55  ;;  %v991_v4 = vcombine.low %v983_v50, %v990_v57  ;;  %v1007_v5 = vrot.slane %v993_v58, %v4394_v8 }
  0x4a   : > { %v1010_v7 = vcombine.low %v622_v48, %v630_v59  ;;  %v656_v9 = vcombine.high %v330_v60, %v330_v60  ;;  %v648_v11 = vcombine.high %v646_v61, %v646_v61  ;;  %v663_v12 = vrot.slane %v330_v60, %v4394_v8 }
  0x4b   : > { %3906 = vmatmul.mubr.msk.f32.gmra.mxu0 %vm1170_vm1, %v923_v24  ;;  %v1017_v13 = vrot.slane %v1009_v63, %v4394_v8  ;;  %v1026_v14 = vcombine.low %v629_v54, %v631_v0  ;;  %v1027_v15 = vcombine.low %v639_v55, %v647_v1  ;;  %v1008_v16 = vcombine.low %v1000_v62, %v1007_v5  ;;  %v4584_v5 = vld [vmem:[%s5892_s4] ss:$0 sm:$0xff] }
  0x4c   : > { %3908 = vmatprep.mubr.msk.f32.mxu0 %vm4249_vm0, %v4247_v2  ;;  %v1024_v17 = vrot.slane %v1010_v7, %v4394_v8  ;;  %v670_v18 = vrot.slane %v656_v9, %v4394_v8  ;;  %v673_v19 = vcombine.high %v331_v10, %v331_v10  ;;  %v1043_v21 = vcombine.low %v646_v61, %v648_v11 }
  0x4d   : > { %v1044_v22 = vcombine.low %v4151_v3, %v663_v12  ;;  %v1034_v23 = vrot.slane %v1026_v14, %v4394_v8  ;;  %v1041_v24 = vrot.slane %v1027_v15, %v4394_v8  ;;  %v671_v25 = vcombine.high %v663_v12, %v663_v12 }
  0x4e   : > { %v680_v26 = vrot.slane %v331_v10, %v4394_v8  ;;  %v1025_v27 = vcombine.low %v1017_v13, %v1024_v17  ;;  %v672_v28 = vcombine.high %v670_v18, %v670_v18  ;;  %v697_v31 = vcombine.high %v333_v20, %v333_v20 }
  0x4f   : > { %3909 = vmatmul.mubr.msk.f32.gmra.mxu0 %vm1170_vm1, %v940_v30  ;;  %v687_v30 = vrot.slane %v673_v19, %v4394_v8  ;;  %v1051_v33 = vrot.slane %v1043_v21, %v4394_v8  ;;  %v1058_v34 = vrot.slane %v1044_v22, %v4394_v8  ;;  %v1042_v36 = vcombine.low %v1034_v23, %v1041_v24 }
  0x50   : > { %3911 = vmatprep.mubr.msk.f32.mxu0 %vm4249_vm0, %v4247_v2  ;;  %v688_v35 = vcombine.high %v680_v26, %v680_v26  ;;  %v1060_v37 = vcombine.low %v671_v25, %v670_v18  ;;  %v1061_v39 = vcombine.low %v672_v28, %v680_v26  ;;  %v711_v41 = vrot.slane %v697_v31, %v4394_v8 }
  0x51   : > { %v689_v40 = vcombine.high %v687_v30, %v687_v30  ;;  %v714_v42 = vcombine.high %v334_v32, %v334_v32  ;;  %v1059_v43 = vcombine.low %v1051_v33, %v1058_v34  ;;  %v721_v47 = vrot.slane %v334_v32, %v4394_v8 }
  0x52   : > { %v1068_v44 = vrot.slane %v1060_v37, %v4394_v8  ;;  %v1077_v45 = vcombine.low %v688_v35, %v687_v30  ;;  %v1075_v48 = vrot.slane %v1061_v39, %v4394_v8  ;;  %v713_v50 = vcombine.high %v711_v41, %v711_v41 }
  0x53   : > { %3912 = vmatmul.mubr.msk.f32.gmra.mxu0 %vm1170_vm1, %v957_v38  ;;  %v704_v38 = vrot.slane %v333_v20, %v4394_v8  ;;  %v1078_v49 = vcombine.low %v689_v40, %v4152_v29  ;;  %v728_v51 = vrot.slane %v714_v42, %v4394_v8  ;;  %v729_v54 = vcombine.high %v721_v47, %v721_v47 }
  0x54   : > { %3914 = vmatprep.mubr.msk.f32.mxu0 %vm4249_vm0, %v4247_v2  ;;  %v1085_v52 = vrot.slane %v1077_v45, %v4394_v8  ;;  %v1076_v55 = vcombine.low %v1068_v44, %v1075_v48  ;;  %v1095_v57 = vcombine.low %v711_v41, %v713_v50  ;;  %v4594_v23 = vstv %s3773_s9 }
  0x55   : > { %v712_v46 = vcombine.high %v704_v38, %v704_v38  ;;  %v730_v58 = vcombine.high %v728_v51, %v728_v51  ;;  %v1111_v62 = vcombine.low %v721_v47, %v729_v54  ;;  %v4600_v29 = vadd.s32 9, %v4594_v23 }
  0x56   : > { %v1109_v61 = vrot.slane %v1095_v57, %v4394_v8  ;;  %v4608_v41 = vadd.s32 16, %v4384_v6  ;;  %vm1849_vm5 = vcmp.ge.s32.totalorder %v4594_v23, 1  ;;  %vm1889_vm9 = vcmp.le.s32.totalorder %v4594_v23, 16 }
  0x57   : > { %3915 = vmatmul.mubr.msk.f32.gmra.mxu0 %vm1170_vm1, %v974_v56  ;;  %v1094_v53 = vcombine.low %v704_v38, %v712_v46  ;;  %v1092_v56 = vrot.slane %v1078_v49, %v4394_v8  ;;  %v1112_v63 = vcombine.low %v728_v51, %v730_v58  ;;  %v1119_v1 = vrot.slane %v1111_v62, %v4394_v8  ;;  %vm4648_vm11 = vmand %vm5902_vm2, %vm1849_vm5 }
  0x58   : > { %3917 = vmatprep.mubr.msk.f32.mxu0 %vm4249_vm0, %v4247_v2  ;;  %vm1858_vm3 = vcmp.ge.s32.totalorder %v4600_v29, 1  ;;  %vm1845_vm4 = vcmp.le.s32.totalorder %v4608_v41, 16  ;;  %vm1898_vm7 = vcmp.le.s32.totalorder %v4600_v29, 16  ;;  %vm4678_vm14 = vmand %vm4648_vm11, %vm1889_vm9 }
  0x59   : > { %v1102_v59 = vrot.slane %v1094_v53, %v4394_v8  ;;  %v1093_v60 = vcombine.low %v1085_v52, %v1092_v56  ;;  %v1126_v3 = vrot.slane %v1112_v63, %v4394_v8  ;;  %vm1886_vm6 = vmand %vm5902_vm2, %vm1858_vm3 }
  0x5a   : > { %vm4627_vm8 = vmand %vm1886_vm6, %vm1898_vm7 }
  0x5b   : > { %3918 = vmatmul.mubr.msk.f32.gmra.mxu0 %vm1170_vm1, %v991_v4  ;;  %v1110_v0 = vcombine.low %v1102_v59, %v1109_v61  ;;  %v1127_v4 = vcombine.low %v1119_v1, %v1126_v3  ;;  %vm1888_vm10 = vmand %vm1845_vm4, %vm1858_vm3 }
  0x5c   : > { %3920 = vmatprep.mubr.msk.f32.mxu0 %vm4249_vm0, %v4247_v2  ;;  %vm1928_vm12 = vmand %vm1888_vm10, %vm1898_vm7 }
  0x5d   : > { %vm4668_vm13 = vmand %vm1858_vm3, %vm1898_vm7  ;;  %vm5903_vm7 = vcmask 1045504  }
  0x5e   : > { %vm4699_vm3 = vmand %vm1845_vm4, %vm1849_vm5 }
  0x5f   : > { %3921 = vmatmul.mubr.msk.f32.gmra.mxu0 %vm1170_vm1, %v1008_v16 }
  0x60   : > { %3923 = vmatprep.mubr.msk.f32.mxu0 %vm4249_vm0, %v4247_v2 }
  0x63   : > { %3924 = vmatmul.mubr.msk.f32.gmra.mxu0 %vm1170_vm1, %v1025_v27 }
  0x64   : > { %3926 = vmatprep.mubr.msk.f32.mxu0 %vm4249_vm0, %v4247_v2 }
  0x67   : > { %3927 = vmatmul.mubr.msk.f32.gmra.mxu0 %vm1170_vm1, %v1042_v36 }
  0x68   : > { %3929 = vmatprep.mubr.msk.f32.mxu0 %vm4249_vm0, %v4247_v2 }
  0x6b   : > { %3930 = vmatmul.mubr.msk.f32.gmra.mxu0 %vm1170_vm1, %v1059_v43 }
  0x6c   : > { %3932 = vmatprep.mubr.msk.f32.mxu0 %vm4249_vm0, %v4247_v2 }
  0x6f   : > { %3933 = vmatmul.mubr.msk.f32.gmra.mxu0 %vm1170_vm1, %v1076_v55 }
  0x70   : > { %3935 = vmatprep.mubr.msk.f32.mxu0 %vm4249_vm0, %v4247_v2 }
  0x73   : > { %3936 = vmatmul.mubr.msk.f32.gmra.mxu0 %vm1170_vm1, %v1093_v60 }
  0x74   : > { %3938 = vmatprep.mubr.msk.f32.mxu0 %vm4249_vm0, %v4247_v2 }
  0x77   : > { %3939 = vmatmul.mubr.msk.f32.gmra.mxu0 %vm1170_vm1, %v1110_v0 }
  0x78   : > { %3941 = vmatprep.mubr.msk.f32.mxu0 %vm4249_vm0, %v4247_v2  ;;  %vm4688_vm0 = vmand %vm1849_vm5, %vm1889_vm9 }
  0x79   : > { %vm4731_vm5 = vmand %vm4699_vm3, %vm1889_vm9 }
  0x7b   : > { %3942 = vmatmul.mubr.msk.f32.gmra.mxu0 %vm1170_vm1, %v1127_v4 }
  0xed   : > { %v1383_v7 = vpop.f32.mrf.mxu1 }
  0xee   : > { %v1384_v9 = vadd.f32 %v4584_v5, %v1383_v7 }
  0xef   : > { %v1283_v10 = vpop.f32.mrf.mxu0  ;;  %v3946_v11 = vpop.f32.mrf.mxu1 }
  0xf0   : > { %v1417_v12 = vmax.f32 %v1384_v9, 0.0  ;;  %v1284_v13 = vadd.f32 %v4584_v5, %v1283_v10 }
  0xf1   : > { %v3886_v14 = vpop.f32.mrf.mxu0  ;;  %v1388_v15 = vpop.f32.mrf.mxu1 }
  0xf2   : > { %v1783_v16 = vcombine.high %v1417_v12, %v1417_v12  ;;  %v4590_v2 = vrot.slane %v1417_v12, %v4394_v8  ;;  %v1397_v17 = vmax.f32 %v1284_v13, 0.0  ;;  %v1389_v18 = vadd.f32 %v4584_v5, %v1388_v15 }
  0xf3   : > { %v1288_v19 = vpop.f32.mrf.mxu0  ;;  %v3949_v20 = vpop.f32.mrf.mxu1 }
  0xf4   : > { %v1797_v21 = vrot.slane %v1783_v16, %v4394_v8  ;;  %v1443_v22 = vcombine.high %v1397_v17, %v1397_v17  ;;  %v1798_v24 = vcombine.high %v4590_v2, %v4590_v2  ;;  %v1418_v25 = vmax.f32 %v1389_v18, 0.0 }
  0xf5   : > { %v1289_v26 = vadd.f32 %v4584_v5, %v1288_v19  ;;  %v3889_v27 = vpop.f32.mrf.mxu0  ;;  %v1393_v28 = vpop.f32.mrf.mxu1  ;;  %v1450_v30 = vrot.slane %v1397_v17, %v4394_v8 }
  0xf6   : > { %v1457_v31 = vrot.slane %v1443_v22, %v4394_v8  ;;  %v1394_v32 = vadd.f32 %v4584_v5, %v1393_v28  ;;  %v1800_v33 = vcombine.high %v1418_v25, %v1418_v25  ;;  %v1807_v34 = vrot.slane %v1418_v25, %v4394_v8 }
  0xf7   : > { %v1398_v35 = vmax.f32 %v1289_v26, 0.0  ;;  %v1293_v36 = vpop.f32.mrf.mxu0  ;;  %v3952_v37 = vpop.f32.mrf.mxu1  ;;  %v1799_v38 = vcombine.high %v1797_v21, %v1797_v21  ;;  %v2358_v42 = vcombine.low %v1798_v24, %v1797_v21  ;;  %v1458_v45 = vcombine.high %v1450_v30, %v1450_v30 }
  0xf8   : > { %v1419_v39 = vmax.f32 %v1394_v32, 0.0  ;;  %v1294_v40 = vadd.f32 %v4584_v5, %v1293_v36  ;;  %v1814_v43 = vrot.slane %v1800_v33, %v4394_v8  ;;  %v1459_v46 = vcombine.high %v1457_v31, %v1457_v31 }
  0xf9   : > { %v3892_v44 = vpop.f32.mrf.mxu0  ;;  %v1460_v47 = vcombine.high %v1398_v35, %v1398_v35  ;;  %v1467_v48 = vrot.slane %v1398_v35, %v4394_v8  ;;  %v1815_v49 = vcombine.high %v1807_v34, %v1807_v34  ;;  %v2359_v53 = vcombine.low %v1799_v38, %v1807_v34 }
  0xfa   : > { %v1816_v50 = vcombine.high %v1814_v43, %v1814_v43  ;;  %v1823_v51 = vrot.slane %v1419_v39, %v4394_v8  ;;  %v1399_v56 = vmax.f32 %v1294_v40, 0.0  ;;  %v1989_v59 = vcombine.low %v1450_v30, %v1458_v45 }
  0xfb   : > { %v1298_v52 = vpop.f32.mrf.mxu0  ;;  %v1474_v54 = vrot.slane %v1460_v47, %v4394_v8  ;;  %v1475_v55 = vcombine.high %v1467_v48, %v1467_v48  ;;  %v1990_v60 = vcombine.low %v1457_v31, %v1459_v46  ;;  %v2366_v62 = vrot.slane %v2358_v42, %v4394_v8 }
  0xfc   : > { %v1299_v57 = vadd.f32 %v4584_v5, %v1298_v52  ;;  %v2375_v63 = vcombine.low %v1815_v49, %v1814_v43  ;;  %v1824_v0 = vcombine.high %v1823_v51, %v1823_v51  ;;  %v2376_v1 = vcombine.low %v1816_v50, %v1823_v51 }
  0xfd   : > { %v3895_v58 = vpop.f32.mrf.mxu0  ;;  %v1476_v61 = vcombine.high %v1474_v54, %v1474_v54  ;;  %v2006_v7 = vcombine.low %v1467_v48, %v1475_v55  ;;  %v1477_v10 = vcombine.high %v1399_v56, %v1399_v56  ;;  %v2373_v12 = vrot.slane %v2359_v53, %v4394_v8 }
  0xfe   : > { %v1400_v3 = vmax.f32 %v1299_v57, 0.0  ;;  %v2004_v15 = vrot.slane %v1990_v60, %v4394_v8  ;;  %v1997_v19 = vrot.slane %v1989_v59, %v4394_v8  ;;  %v2398_v20 = vrot.slane %v1824_v0, %v4394_v8 }
  0xff   : > { %v1303_v4 = vpop.f32.mrf.mxu0  ;;  %v2007_v9 = vcombine.low %v1474_v54, %v1476_v61  ;;  %v2374_v17 = vcombine.low %v2366_v62, %v2373_v12  ;;  %v1484_v21 = vrot.slane %v1399_v56, %v4394_v8  ;;  %v2390_v22 = vrot.slane %v2376_v1, %v4394_v8 }
 0x100   : > { %v1494_v13 = vcombine.high %v1400_v3, %v1400_v3  ;;  %v1304_v18 = vadd.f32 %v4584_v5, %v1303_v4  ;;  %v2014_v26 = vrot.slane %v2006_v7, %v4394_v8  ;;  %v1491_v27 = vrot.slane %v1477_v10, %v4394_v8 }
 0x101   : > { %v3898_v14 = vpop.f32.mrf.mxu0  ;;  %v2021_v16 = vrot.slane %v2007_v9, %v4394_v8  ;;  %v4658_v28 = vsel %vm4627_vm8, %v2374_v17, 0.0  ;;  %v2383_v30 = vrot.slane %v2375_v63, %v4394_v8  ;;  %v2005_v34 = vcombine.low %v1997_v19, %v2004_v15 }
 0x102   : > { %v1508_v31 = vrot.slane %v1494_v13, %v4394_v8  ;;  %2859 = vrot.lane.b32.xlu0 %v4658_v28, %s4250_s27  ;;  %v4672_v36 = vmax.f32 %v1304_v18, 0.0  ;;  %v1492_v39 = vcombine.high %v1484_v21, %v1484_v21  ;;  %v4682_v29 = vsel %vm1928_vm12, %v2398_v20, 0.0 }
 0x103   : > { %v1308_v24 = vpop.f32.mrf.mxu0  ;;  %v2022_v35 = vcombine.low %v2014_v26, %v2021_v16  ;;  %v2391_v37 = vcombine.low %v2383_v30, %v2390_v22  ;;  %5916 = vst [vmem:[#allocation5_spill] sm:$0xff] %v4682_v29  ;;  %v4693_v43 = vadd.s32 1, %v4594_v23  ;;  %v2029_v45 = vrot.slane %v1484_v21, %v4394_v8 }
 0x104   : > { %v1493_v46 = vcombine.high %v1491_v27, %v1491_v27  ;;  %v1501_v47 = vrot.slane %v1400_v3, %v4394_v8  ;;  %v2581_v49 = vrot.slane %v4658_v28, 1  ;;  %v1510_v50 = vcombine.high %v1508_v31, %v1508_v31 }
 0x105   : > { %v3901_v33 = vpop.f32.mrf.mxu0  ;;  %v4707_v48 = vsel %vm4668_vm13, %v2391_v37, 0.0  ;;  %v1309_v52 = vadd.f32 %v4584_v5, %v1308_v24  ;;  %v4716_v54 = vrot.slane %v4672_v36, %v4394_v8  ;;  %v2584_v55 = vrot.slane %v4682_v29, 1 }
 0x106   : > { %2861 = vrot.lane.b32.xlu1 %v4707_v48, %s4250_s27  ;;  %v2582_v51 = vrot.slane %v4707_v48, 1  ;;  %v4721_v56 = vsel %vm4678_vm14, %v2005_v34, 0.0  ;;  %v4725_v57 = vsel %vm4688_vm0, %v2022_v35, 0.0  ;;  %vm1850_vm6 = vcmp.ge.s32.totalorder %v4693_v43, 1 }
 0x107   : > { %v1313_v40 = vpop.f32.mrf.mxu0  ;;  %v2030_v61 = vcombine.low %v1492_v39, %v1491_v27  ;;  %v1509_v62 = vcombine.high %v1501_v47, %v1501_v47  ;;  %v2031_v63 = vcombine.low %v1493_v46, %v1501_v47  ;;  %v1402_v1 = vmax.f32 %v1309_v52, 0.0  ;;  %vm1862_vm8 = vmand %vm5902_vm2, %vm1850_vm6 }
 0x108   : > { %v2583_v59 = vsel %vm2483_vm15, %v2581_v49, %v2582_v51  ;;  %v2585_v0 = vsel %vm2483_vm15, %v2582_v51, %v2584_v55  ;;  %v1314_v3 = vadd.f32 %v4584_v5, %v1313_v40  ;;  %v2484_v4 = vrot.slane %v4721_v56, 1  ;;  %vm1864_vm12 = vmand %vm1845_vm4, %vm1850_vm6 }
 0x109   : > { %v3904_v53 = vpop.f32.mrf.mxu0  ;;  %2907 = vrot.lane.b32.xlu0 %v2583_v59, %s4251_s12  ;;  %v2485_v7 = vrot.slane %v4725_v57, 1  ;;  %v2431_v10 = vsel %vm4731_vm5, %v2029_v45, 0.0  ;;  %v2048_v11 = vcombine.low %v1510_v50, %v4716_v54  ;;  %v2525_v12 = vrot.slane %v4721_v56, 2 }
 0x10a   : > { %2909 = vrot.lane.b32.xlu1 %v2585_v0, %s4251_s12  ;;  %v2526_v13 = vrot.slane %v4725_v57, 2  ;;  %v1511_v14 = vcombine.high %v4672_v36, %v4672_v36  ;;  %v2045_v17 = vrot.slane %v2031_v63, %v4394_v8  ;;  %v2047_v18 = vcombine.low %v1509_v62, %v1508_v31 }
 0x10b   : > { %v4736_v60 = vpop.f32.mrf.mxu0  ;;  %v2486_v15 = vsel %vm2483_vm15, %v2484_v4, %v2485_v7  ;;  %vm1890_vm9 = vcmp.le.s32.totalorder %v4693_v43, 16  ;;  %v1528_v20 = vcombine.high %v1402_v1, %v1402_v1  ;;  %v4763_v21 = vmax.f32 %v1314_v3, 0.0 }
 0x10c   : > { %v2527_v19 = vsel %vm5903_vm7, %v2525_v12, %v2526_v13  ;;  %v2487_v22 = vrot.slane %v2431_v10, 1  ;;  %v2062_v25 = vrot.slane %v2048_v11, %v4394_v8  ;;  %v2528_v26 = vrot.slane %v2431_v10, 2  ;;  %vm1902_vm10 = vmand %vm1862_vm8, %vm1890_vm9 }
 0x10d   : > { %v3907_v9 = vpop.f32.mrf.mxu0  ;;  %2591 = vrot.lane.b32.xlu0 %v2486_v15, %s4252_s13  ;;  %v2038_v27 = vrot.slane %v2030_v61, %v4394_v8  ;;  %v1525_v30 = vrot.slane %v1511_v14, %v4394_v8  ;;  %v1526_v31 = vcombine.high %v4716_v54, %v4716_v54  ;;  %v1535_v34 = vrot.slane %v1402_v1, %v4394_v8  ;;  %vm1903_vm11 = vmand %vm1850_vm6, %vm1890_vm9 }
 0x10e   : > { %2639 = vrot.lane.b32.xlu1 %v2527_v19, %s5897_s28  ;;  %v2488_v32 = vsel %vm2483_vm15, %v2485_v7, %v2487_v22  ;;  %v2529_v35 = vsel %vm5903_vm7, %v2526_v13, %v2528_v26  ;;  %v2055_v37 = vrot.slane %v2047_v18, %v4394_v8  ;;  %v1542_v38 = vrot.slane %v1528_v20, %v4394_v8  ;;  %vm1904_vm13 = vmand %vm1864_vm12, %vm1890_vm9 }
 0x10f   : > { %v4753_v16 = vpop.f32.mrf.mxu0  ;;  %v2046_v36 = vcombine.low %v2038_v27, %v2045_v17  ;;  %v1552_v39 = vrot.slane %v4763_v21, %v4394_v8  ;;  %v1527_v45 = vcombine.high %v1525_v30, %v1525_v30  ;;  %v2070_v46 = vrot.slane %v1526_v31, %v4394_v8 }
 0x110   : > { %v2063_v44 = vcombine.low %v2055_v37, %v2062_v25  ;;  %v1543_v49 = vcombine.high %v1535_v34, %v1535_v34  ;;  %v1544_v52 = vcombine.high %v1542_v38, %v1542_v38  ;;  %v4808_v62 = vadd.s32 2, %v4594_v23 }
 0x111   : > { %v3910_v24 = vpop.f32.mrf.mxu0  ;;  %2593 = vrot.lane.b32.xlu0 %v2488_v32, %s4252_s13  ;;  %v4792_v42 = vsel %vm1902_vm10, %v2046_v36, 0.0  ;;  %v1560_v53 = vcombine.high %v1552_v39, %v1552_v39  ;;  %v2071_v58 = vcombine.low %v1525_v30, %v1527_v45  ;;  %v2434_v59 = vsel %vm1904_vm13, %v2070_v46, 0.0 }
 0x112   : > { %2641 = vrot.lane.b32.xlu1 %v2529_v35, %s5897_s28  ;;  %v4799_v50 = vsel %vm1903_vm11, %v2063_v44, 0.0  ;;  %v2489_v51 = vrot.slane %v4792_v42, 1  ;;  %v2072_v63 = vcombine.low %v1535_v34, %v1543_v49  ;;  %v2088_v1 = vcombine.low %v1542_v38, %v1544_v52 }
 0x113   : > { %v4774_v33 = vpop.f32.mrf.mxu0  ;;  %v2490_v55 = vrot.slane %v4799_v50, 1  ;;  %v2089_v43 = vcombine.low %v1552_v39, %v1560_v53  ;;  %v2492_v3 = vrot.slane %v2434_v59, 1  ;;  %v2530_v4 = vrot.slane %v4792_v42, 2 }
 0x114   : > { %v2531_v9 = vrot.slane %v4799_v50, 2  ;;  %v2079_v11 = vrot.slane %v2071_v58, %v4394_v8  ;;  %vm1851_vm14 = vcmp.ge.s32.totalorder %v4808_v62, 1  ;;  %v2086_v13 = vrot.slane %v2072_v63, %v4394_v8 }
 0x115   : > { %v3913_v40 = vpop.f32.mrf.mxu0  ;;  %2687 = vrot.lane.b32.xlu0 %v4792_v42, %s4254_s17  ;;  %v2491_v0 = vsel %vm2483_vm15, %v2489_v51, %v2490_v55  ;;  %v2493_v14 = vsel %vm2483_vm15, %v2490_v55, %v2492_v3  ;;  %v2096_v18 = vrot.slane %v2088_v1, %v4394_v8  ;;  %v2103_v19 = vrot.slane %v2089_v43, %v4394_v8  ;;  %vm1865_vm0 = vmand %vm5902_vm2, %vm1851_vm14 }
 0x116   : > { %2689 = vrot.lane.b32.xlu1 %v4799_v50, %s4254_s17  ;;  %v2532_v15 = vsel %vm5903_vm7, %v2530_v4, %v2531_v9  ;;  %v1319_v24 = vadd.f32 %v4584_v5, %v4736_v60  ;;  %vm1891_vm3 = vcmp.le.s32.totalorder %v4808_v62, 16  ;;  %v1545_v26 = vcombine.high %v4763_v21, %v4763_v21  ;;  %vm1867_vm8 = vmand %vm1845_vm4, %vm1851_vm14 }
 0x117   : > { %v4795_v47 = vpop.f32.mrf.mxu0  ;;  %v2533_v32 = vrot.slane %v2434_v59, 2  ;;  %v2087_v60 = vcombine.low %v2079_v11, %v2086_v13  ;;  %vm1905_vm5 = vmand %vm1865_vm0, %vm1891_vm3  ;;  %v2104_v36 = vcombine.low %v2096_v18, %v2103_v19  ;;  %v1324_v44 = vadd.f32 %v4584_v5, %v4753_v16 }
 0x118   : > { %v1404_v37 = vmax.f32 %v1319_v24, 0.0  ;;  %vm1906_vm6 = vmand %vm1851_vm14, %vm1891_vm3  ;;  %v1559_v40 = vrot.slane %v1545_v26, %v4394_v8 }
 0x119   : > { %v3916_v54 = vpop.f32.mrf.mxu0  ;;  %2735 = vrot.lane.b32.xlu0 %v2491_v0, %s4255_s18  ;;  %v2534_v51 = vsel %vm5903_vm7, %v2531_v9, %v2533_v32  ;;  %v4866_v52 = vsel %vm1905_vm5, %v2087_v60, 0.0  ;;  %v4873_v55 = vsel %vm1906_vm6, %v2104_v36, 0.0  ;;  %vm1907_vm9 = vmand %vm1867_vm8, %vm1891_vm3  ;;  %vm5901_vm6 = vcmask 1043456  }
 0x11a   : > { %2595 = vrot.lane.b32.xlu1 %v2491_v0, %s4252_s13  ;;  %v1562_v58 = vcombine.high %v1404_v37, %v1404_v37  ;;  %v2111_v0 = vrot.slane %v1559_v40, %v4394_v8  ;;  %v2495_v3 = vrot.slane %v4873_v55, 1  ;;  %v1561_v9 = vcombine.high %v1559_v40, %v1559_v40 }
 0x11b   : > { %v1338_v61 = vpop.f32.mrf.mxu0  ;;  %v2536_v40 = vrot.slane %v4873_v55, 2 }
 0x11c   : > { %v1339_v10 = vadd.f32 %v4584_v5, %v1338_v61  ;;  %v1405_v61 = vmax.f32 %v1324_v44, 0.0  ;;  %v1576_v11 = vrot.slane %v1562_v58, %v4394_v8 }
 0x11d   : > { %v3919_v7 = vpop.f32.mrf.mxu0  ;;  %2737 = vrot.lane.b32.xlu0 %v2493_v14, %s4255_s18 }
 0x11e   : > { %v4821_v17 = vmax.f32 %v1339_v10, 0.0  ;;  %2783 = vrot.lane.b32.xlu1 %v2532_v15, %s5899_s19  ;;  %v1569_v10 = vrot.slane %v1404_v37, %v4394_v8  ;;  %v1579_v13 = vcombine.high %v1405_v61, %v1405_v61  ;;  %v1586_v62 = vrot.slane %v1405_v61, %v4394_v8 }
 0x11f   : > { %v1343_v12 = vpop.f32.mrf.mxu0  ;;  %v2535_v61 = vrot.slane %v4866_v52, 2 }
 0x120   : > { %v1344_v20 = vadd.f32 %v4584_v5, %v1343_v12  ;;  %v1630_v25 = vcombine.high %v4821_v17, %v4821_v17  ;;  %v2494_v12 = vrot.slane %v4866_v52, 1  ;;  %v1577_v26 = vcombine.high %v1569_v10, %v1569_v10 }
 0x121   : > { %v3922_v22 = vpop.f32.mrf.mxu0  ;;  %2597 = vrot.lane.b32.xlu0 %v2493_v14, %s4252_s13  ;;  %v4911_v60 = vrot.slane %v1579_v13, %v4394_v8 }
 0x122   : > { %v1409_v27 = vmax.f32 %v1344_v20, 0.0  ;;  %v4840_v31 = vrot.slane %v1630_v25, %v4394_v8  ;;  %2643 = vrot.lane.b32.xlu1 %v2532_v15, %s5897_s28  ;;  %v4898_v19 = vsel %vm2483_vm15, %v2494_v12, %v2495_v3  ;;  %v4901_v22 = vsel %vm1907_vm9, %v2111_v0, 0.0 }
 0x123   : > { %v1348_v30 = vpop.f32.mrf.mxu0  ;;  %v2497_v36 = vrot.slane %v4901_v22, 1 }
 0x124   : > { %v1647_v34 = vcombine.high %v1409_v27, %v1409_v27  ;;  %v1646_v21 = vcombine.high %v4840_v31, %v4840_v31  ;;  %v4849_v38 = vrot.slane %v1409_v27, %v4394_v8  ;;  %v1349_v39 = vadd.f32 %v4584_v5, %v1348_v30 }
 0x125   : > { %v3925_v35 = vpop.f32.mrf.mxu0  ;;  %2785 = vrot.lane.b32.xlu0 %v2534_v51, %s5899_s19  ;;  %v4908_v27 = vcombine.low %v1561_v9, %v1569_v10  ;;  %v1578_v30 = vcombine.high %v1576_v11, %v1576_v11  ;;  %v4948_v10 = vsel %vm5903_vm7, %v2535_v61, %v2536_v40 }
 0x126   : > { %v4860_v45 = vrot.slane %v1647_v34, %v4394_v8  ;;  %v4863_v49 = vcombine.low %v1646_v21, %v4849_v38  ;;  %v1410_v53 = vmax.f32 %v1349_v39, 0.0  ;;  %2831 = vrot.lane.b32.xlu1 %v4866_v52, %s4250_s27 }
 0x127   : > { %v1353_v46 = vpop.f32.mrf.mxu0 }
 0x128   : > { %v1663_v16 = vcombine.high %v4860_v45, %v4860_v45  ;;  %v4876_v59 = vrot.slane %v1410_v53, %v4394_v8  ;;  %v1354_v43 = vadd.f32 %v4584_v5, %v1353_v46  ;;  %v1664_v34 = vcombine.high %v1410_v53, %v1410_v53 }
 0x129   : > { %v3928_v54 = vpop.f32.mrf.mxu0  ;;  %2645 = vrot.lane.b32.xlu0 %v2534_v51, %s5897_s28  ;;  %v1594_v46 = vcombine.high %v1586_v62, %v1586_v62 }
 0x12a   : > { %v4884_v1 = vcombine.low %v1663_v16, %v4876_v59  ;;  %2691 = vrot.lane.b32.xlu1 %v4866_v52, %s4254_s17  ;;  %v1411_v18 = vmax.f32 %v1354_v43, 0.0  ;;  %v4930_v54 = vrot.slane %v4821_v17, %v4394_v8  ;;  %v1678_v0 = vrot.slane %v1664_v34, %v4394_v8 }
 0x12b   : > { %v1358_v63 = vpop.f32.mrf.mxu0 }
 0x12c   : > { %v1359_v4 = vadd.f32 %v4584_v5, %v1358_v63  ;;  %v1681_v21 = vcombine.high %v1411_v18, %v1411_v18  ;;  %v1688_v43 = vrot.slane %v1411_v18, %v4394_v8  ;;  %v1680_v34 = vcombine.high %v1678_v0, %v1678_v0 }
 0x12d   : > { %v3931_v7 = vpop.f32.mrf.mxu0  ;;  %2833 = vrot.lane.b32.xlu0 %v4873_v55, %s4250_s27 }
 0x12e   : > { %v1412_v14 = vmax.f32 %v1359_v4, 0.0  ;;  %2879 = vrot.lane.b32.xlu1 %v4898_v19, %s4251_s12  ;;  %v4942_v7 = vsel %vm2483_vm15, %v2495_v3, %v2497_v36  ;;  %v1695_v17 = vrot.slane %v1681_v21, %v4394_v8  ;;  %v2538_v36 = vrot.slane %v4901_v22, 2 }
 0x12f   : > { %v1363_v15 = vpop.f32.mrf.mxu0  ;;  %v2120_v21 = vrot.slane %v4908_v27, %v4394_v8 }
 0x130   : > { %v1364_v20 = vadd.f32 %v4584_v5, %v1363_v15  ;;  %v1698_v24 = vcombine.high %v1412_v14, %v1412_v14  ;;  %v2113_v15 = vcombine.low %v1577_v26, %v1576_v11  ;;  %v1705_v18 = vrot.slane %v1412_v14, %v4394_v8 }
 0x131   : > { %v3934_v25 = vpop.f32.mrf.mxu0  ;;  %2693 = vrot.lane.b32.xlu0 %v4873_v55, %s4254_s17  ;;  %v1645_v11 = vcombine.high %v4930_v54, %v4930_v54  ;;  %v1662_v14 = vcombine.high %v4849_v38, %v4849_v38 }
 0x132   : > { %v1413_v32 = vmax.f32 %v1364_v20, 0.0  ;;  %v4914_v35 = vrot.slane %v1698_v24, %v4394_v8  ;;  %2739 = vrot.lane.b32.xlu1 %v4898_v19, %s4255_s18  ;;  %v4961_v20 = vadd.s32 3, %v4594_v23  ;;  %v4964_v24 = vadd.s32 8, %v4594_v23 }
 0x133   : > { %v1368_v37 = vpop.f32.mrf.mxu0  ;;  %v2129_v25 = vcombine.low %v1578_v30, %v1586_v62  ;;  %v1697_v62 = vcombine.high %v1695_v17, %v1695_v17 }
 0x134   : > { %v1715_v39 = vcombine.high %v1413_v32, %v1413_v32  ;;  %v1369_v44 = vadd.f32 %v4584_v5, %v1368_v37  ;;  %v1714_v51 = vcombine.high %v4914_v35, %v4914_v35  ;;  %v4926_v53 = vrot.slane %v1413_v32, %v4394_v8 }
 0x135   : > { %v3937_v16 = vpop.f32.mrf.mxu0  ;;  %2881 = vrot.lane.b32.xlu0 %v4942_v7, %s4251_s12  ;;  %v2130_v32 = vcombine.low %v1594_v46, %v4911_v60  ;;  %vm1852_vm10 = vcmp.ge.s32.totalorder %v4961_v20, 1  ;;  %vm1857_vm11 = vcmp.ge.s32.totalorder %v4964_v24, 1  ;;  %v2137_v27 = vrot.slane %v2129_v25, %v4394_v8 }
 0x136   : > { %v4933_v58 = vrot.slane %v1715_v39, %v4394_v8  ;;  %v1414_v63 = vmax.f32 %v1369_v44, 0.0  ;;  %v4939_v4 = vcombine.low %v1714_v51, %v4926_v53  ;;  %2927 = vrot.lane.b32.xlu1 %v4948_v10, %s4257_s22  ;;  %v1696_v39 = vcombine.high %v1688_v43, %v1688_v43  ;;  %vm1868_vm12 = vmand %vm5902_vm2, %vm1852_vm10 }
 0x137   : > { %v4944_v9 = vpop.f32.mrf.mxu0  ;;  %v2127_v44 = vrot.slane %v2113_v15, %v4394_v8  ;;  %v1713_v51 = vcombine.high %v1705_v18, %v1705_v18  ;;  %v2194_v46 = vcombine.low %v1645_v11, %v4840_v31  ;;  %v2211_v16 = vcombine.low %v1662_v14, %v4860_v45  ;;  %vm5067_vm5 = vmand %vm1845_vm4, %vm1857_vm11 }
 0x138   : > { %v1731_v12 = vcombine.high %v4933_v58, %v4933_v58  ;;  %v4953_v13 = vrot.slane %v1414_v63, %v4394_v8  ;;  %v1732_v38 = vcombine.high %v1414_v63, %v1414_v63  ;;  %v2144_v63 = vrot.slane %v2130_v32, %v4394_v8  ;;  %vm5087_vm8 = vmand %vm1845_vm4, %vm1852_vm10 }
 0x139   : > { %v3940_v3 = vpop.f32.mrf.mxu0  ;;  %2599 = vrot.lane.b32.xlu0 %v4898_v19, %s4252_s13  ;;  %v1730_v19 = vcombine.high %v4926_v53, %v4926_v53  ;;  %v4992_v15 = vsel %vm5903_vm7, %v2536_v40, %v2538_v36  ;;  %v2253_v25 = vcombine.low %v1705_v18, %v1713_v51  ;;  %vm1892_vm13 = vcmp.le.s32.totalorder %v4961_v20, 16  ;;  %v3111_v20 = vld [vmem:[%s5890_s2 + $0x8] sm:$0xff] }
 0x13a   : > { %v4971_v26 = vcombine.low %v1731_v12, %v4953_v13  ;;  %2741 = vrot.lane.b32.xlu1 %v4942_v7, %s4255_s18  ;;  %v2235_v12 = vcombine.low %v1678_v0, %v1680_v34  ;;  %v2236_v3 = vcombine.low %v1688_v43, %v1696_v39  ;;  %v4996_v31 = vrot.slane %v1732_v38, %v4394_v8  ;;  %vm5022_vm14 = vmand %vm1868_vm12, %vm1892_vm13 }
 0x13b   : > { %v1378_v37 = vpop.f32.mrf.mxu0  ;;  %v1747_v45 = vcombine.high %v4953_v13, %v4953_v13  ;;  %v2202_v40 = vrot.slane %v2194_v46, %v4394_v8  ;;  %v2209_v53 = vrot.slane %v4863_v49, %v4394_v8  ;;  %v2219_v0 = vrot.slane %v2211_v16, %v4394_v8  ;;  %vm1909_vm0 = vmand %vm1852_vm10, %vm1892_vm13 }
 0x13c   : > { %v1379_v30 = vadd.f32 %v4584_v5, %v1378_v37  ;;  %v2252_v37 = vcombine.low %v1695_v17, %v1697_v62  ;;  %v2226_v17 = vrot.slane %v4884_v1, %v4394_v8  ;;  %v2277_v13 = vcombine.low %v1730_v19, %v4933_v58  ;;  %vm1910_vm10 = vmand %vm5087_vm8, %vm1892_vm13 }
 0x13d   : > { %v3943_v22 = vpop.f32.mrf.mxu0  ;;  %2787 = vrot.lane.b32.xlu0 %v4948_v10, %s5899_s19  ;;  %v2128_v11 = vcombine.low %v2120_v21, %v2127_v44  ;;  %v2243_v14 = vrot.slane %v2235_v12, %v4394_v8  ;;  %v2250_v32 = vrot.slane %v2236_v3, %v4394_v8  ;;  %v2145_v36 = vcombine.low %v2137_v27, %v2144_v63 }
 0x13e   : > { %v1416_v61 = vmax.f32 %v1379_v30, 0.0  ;;  %2929 = vrot.lane.b32.xlu1 %v4992_v15, %s4257_s22  ;;  %v2260_v34 = vrot.slane %v2252_v37, %v4394_v8  ;;  %v2267_v39 = vrot.slane %v2253_v25, %v4394_v8  ;;  %v2294_v1 = vcombine.low %v1747_v45, %v4996_v31 }
 0x13f   : > { %vm1897_vm3 = vcmp.le.s32.totalorder %v4964_v24, 16  ;;  %v1595_v21 = vcombine.high %v4911_v60, %v4911_v60  ;;  %v1329_v62 = vadd.f32 %v4584_v5, %v4774_v33  ;;  %v1334_v30 = vadd.f32 %v4584_v5, %v4795_v47  ;;  %v3114_v60 = vld [vmem:[%s5890_s2 + $0x20] sm:$0xf] }
 0x140   : > { %v1766_v22 = vcombine.high %v1416_v61, %v1416_v61  ;;  %v1773_v29 = vrot.slane %v1416_v61, %v4394_v8  ;;  %v2291_v44 = vrot.slane %v2277_v13, %v4394_v8  ;;  %v5048_v38 = vcombine.low %v2219_v0, %v2226_v17  ;;  %3953 = vmatprep.subr.msk.mxu1 %vm5901_vm6, %v3114_v60  ;;  %vm5100_vm9 = vmand %vm5067_vm5, %vm1897_vm3 }
 0x141   : > { %2601 = vrot.lane.b32.xlu0 %v4942_v7, %s4252_s13  ;;  %v5043_v7 = vcombine.low %v2202_v40, %v2209_v53  ;;  %v2301_v33 = vrot.slane %v4971_v26, %v4394_v8  ;;  %v5057_v47 = vsel %vm5022_vm14, %v2128_v11, 0.0  ;;  %v5059_v27 = vsel %vm1909_vm0, %v2145_v36, 0.0  ;;  %v3113_v26 = vld [vmem:[%s5890_s2 + $0x18] sm:$0xff]  ;;  %3954 = vmatpush3.msk.msra.mxu1 %vm5901_vm6, %v3114_v60  ;;  %v3112_v40 = vld [vmem:[%s5890_s2 + $0x10] sm:$0xff]  ;;  %vm1924_vm12 = vmand %vm1857_vm11, %vm1897_vm3 }
 0x142   : > { %v1780_v43 = vrot.slane %v1766_v22, %v4394_v8  ;;  %v1781_v18 = vcombine.high %v1773_v29, %v1773_v29  ;;  %2647 = vrot.lane.b32.xlu1 %v4948_v10, %s5897_s28  ;;  %v2284_v10 = vrot.slane %v4939_v4, %v4394_v8  ;;  %v5061_v46 = vcombine.low %v2243_v14, %v2250_v32  ;;  %v3110_v36 = vld [vmem:[%s5890_s2] sm:$0xff] }
 0x143   : > { %v2308_v4 = vrot.slane %v2294_v1, %v4394_v8  ;;  %v5079_v61 = vcombine.low %v2260_v34, %v2267_v39  ;;  %v2357_v63 = vrot.slane %v4590_v2, %v4394_v8  ;;  %v1406_v19 = vmax.f32 %v1329_v62, 0.0  ;;  %3955 = vmatprep.subr.mxu1 %v3113_v26 }
 0x144   : > { %v1782_v58 = vcombine.high %v1780_v43, %v1780_v43  ;;  %v2334_v51 = vcombine.low %v1773_v29, %v1781_v18  ;;  %v5094_v37 = vcombine.low %v2284_v10, %v2291_v44  ;;  %v2152_v22 = vrot.slane %v1595_v21, %v4394_v8  ;;  %3956 = vmatpush3.msra.mxu1 %v3113_v26 }
 0x145   : > { %2789 = vrot.lane.b32.xlu0 %v4992_v15, %s5899_s19  ;;  %v2499_v25 = vrot.slane %v5057_v47, 1  ;;  %v2500_v45 = vrot.slane %v5059_v27, 1  ;;  %v1407_v53 = vmax.f32 %v1334_v30, 0.0  ;;  %v5118_v0 = vcombine.low %v2301_v33, %v2308_v4  ;;  %3957 = vmatprep.subr.mxu1 %v3112_v40  ;;  %s5932_s19 = smov 8  }
 0x146   : > { %v2335_v16 = vcombine.low %v1780_v43, %v1782_v58  ;;  %2835 = vrot.lane.b32.xlu1 %v5057_v47, %s4250_s27  ;;  %v2342_v3 = vrot.slane %v2334_v51, %v4394_v8  ;;  %v2587_v17 = vrot.slane %v4707_v48, 2  ;;  %v1596_v13 = vcombine.high %v1406_v19, %v1406_v19  ;;  %3958 = vmatpush3.msra.mxu1 %v3112_v40 }
 0x147   : > { %v2586_v11 = vrot.slane %v4658_v28, 2  ;;  %v2501_v14 = vsel %vm2483_vm15, %v2499_v25, %v2500_v45  ;;  %v2440_v32 = vsel %vm1910_vm10, %v2152_v22, 0.0  ;;  %v1613_v34 = vcombine.high %v1407_v53, %v1407_v53  ;;  %3959 = vmatprep.subr.mxu1 %v3111_v20 }
 0x148   : > { %v2349_v43 = vrot.slane %v2335_v16, %v4394_v8  ;;  %v1374_v49 = vadd.f32 %v4584_v5, %v4944_v9  ;;  %v1603_v9 = vrot.slane %v1406_v19, %v4394_v8  ;;  %v1610_v62 = vrot.slane %v1596_v13, %v4394_v8  ;;  %3960 = vmatpush3.msra.mxu1 %v3111_v20 }
 0x149   : > { %2649 = vrot.lane.b32.xlu0 %v4992_v15, %s5897_s28  ;;  %v2455_v15 = vsel %vm5100_vm9, %v2357_v63, 0.0  ;;  %v5148_v5 = vsel %vm5903_vm7, %v2586_v11, %v2587_v17  ;;  %v2502_v30 = vrot.slane %v2440_v32, 1  ;;  %v2540_v10 = vrot.slane %v5057_v47, 2  ;;  %3961 = vmatprep.subr.mxu1 %v3110_v36  ;;  %s5931_s28 = smov 20   ;;  %vm1883_vm9 = vmand %vm5902_vm2, %vm1857_vm11 }
 0x14a   : > { %2695 = vrot.lane.b32.xlu1 %v5057_v47, %s4254_s17  ;;  %v2350_v18 = vcombine.low %v2342_v3, %v2349_v43  ;;  %v2571_v28 = vrot.slane %v2455_v15, 1  ;;  %v2576_v21 = vrot.slane %v2455_v15, 2  ;;  %v2541_v44 = vrot.slane %v5059_v27, 2  ;;  %3962 = vmatpush3.msra.mxu1 %v3110_v36  ;;  %vm1923_vm10 = vmand %vm1883_vm9, %vm1897_vm3 }
 0x14b   : > { %v1620_v33 = vrot.slane %v1407_v53, %v4394_v8  ;;  %v1627_v29 = vrot.slane %v1613_v34, %v4394_v8  ;;  %v1415_v4 = vmax.f32 %v1374_v49, 0.0  ;;  %v1611_v16 = vcombine.high %v1603_v9, %v1603_v9 }
 0x14c   : > { %v5141_v39 = vsel %vm1924_vm12, %v2350_v18, 0.0  ;;  %v1612_v26 = vcombine.high %v1610_v62, %v1610_v62  ;;  %v2503_v63 = vsel %vm2483_vm15, %v2500_v45, %v2502_v30  ;;  %v2542_v12 = vsel %vm5903_vm7, %v2540_v10, %v2541_v44 }
 0x14d   : > { %2837 = vrot.lane.b32.xlu0 %v5059_v27, %s4250_s27  ;;  %v2569_v1 = vrot.slane %v5141_v39, 1  ;;  %v2574_v58 = vrot.slane %v5141_v39, 2  ;;  %v1628_v19 = vcombine.high %v1620_v33, %v1620_v33  ;;  %v1629_v3 = vcombine.high %v1627_v29, %v1627_v29 }
 0x14e   : > { %2883 = vrot.lane.b32.xlu1 %v2501_v14, %s4251_s12  ;;  %v1749_v2 = vcombine.high %v1415_v4, %v1415_v4  ;;  %v1830_v22 = vadd.s32 4, %v4594_v23  ;;  %v1756_v25 = vrot.slane %v1415_v4, %v4394_v8  ;;  %v2153_v40 = vcombine.low %v1603_v9, %v1611_v16 }
 0x14f   : > { %v5157_v51 = vsel %vm2483_vm15, %v2569_v1, %v2571_v28  ;;  %v5162_v60 = vsel %vm5903_vm7, %v2574_v58, %v2576_v21  ;;  %v2154_v53 = vcombine.low %v1610_v62, %v1612_v26  ;;  %v2543_v43 = vrot.slane %v2440_v32, 2 }
 0x150   : > { %v2170_v15 = vcombine.low %v1620_v33, %v1628_v19  ;;  %v2171_v13 = vcombine.low %v1627_v29, %v1629_v3  ;;  %v1763_v45 = vrot.slane %v1749_v2, %v4394_v8  ;;  %vm1853_vm13 = vcmp.ge.s32.totalorder %v1830_v22, 1 }
 0x151   : > { %2697 = vrot.lane.b32.xlu0 %v5059_v27, %s4254_s17  ;;  %v1764_v20 = vcombine.high %v1756_v25, %v1756_v25  ;;  %v2161_v18 = vrot.slane %v2153_v40, %v4394_v8  ;;  %v2168_v11 = vrot.slane %v2154_v53, %v4394_v8  ;;  %v2544_v34 = vsel %vm5903_vm7, %v2541_v44, %v2543_v43  ;;  %vm1871_vm0 = vmand %vm5902_vm2, %vm1853_vm13 }
 0x152   : > { %2743 = vrot.lane.b32.xlu1 %v2501_v14, %s4255_s18  ;;  %v2178_v49 = vrot.slane %v2170_v15, %v4394_v8  ;;  %v2185_v32 = vrot.slane %v2171_v13, %v4394_v8  ;;  %v1765_v36 = vcombine.high %v1763_v45, %v1763_v45  ;;  %vm1893_vm14 = vcmp.le.s32.totalorder %v1830_v22, 16  ;;  %vm1873_vm12 = vmand %vm1845_vm4, %vm1853_vm13 }
 0x153   : > { %v2169_v28 = vcombine.low %v2161_v18, %v2168_v11  ;;  %vm1911_vm5 = vmand %vm1871_vm0, %vm1893_vm14  ;;  %v2193_v16 = vrot.slane %v4930_v54, %v4394_v8  ;;  %v1831_v15 = vadd.s32 5, %v4594_v23  ;;  %vm3076_vm6 = vcmask 228352  }
 0x154   : > { %v2318_v21 = vcombine.low %v1763_v45, %v1765_v36  ;;  %v2186_v9 = vcombine.low %v2178_v49, %v2185_v32  ;;  %vm1912_vm8 = vmand %vm1853_vm13, %vm1893_vm14  ;;  %v1679_v36 = vcombine.high %v4876_v59, %v4876_v59 }
 0x155   : > { %2885 = vrot.lane.b32.xlu0 %v2503_v63, %s4251_s12  ;;  %v5194_v30 = vsel %vm1911_vm5, %v2169_v28, 0.0  ;;  %vm1913_vm11 = vmand %vm1873_vm12, %vm1893_vm14  ;;  %vm1854_vm3 = vcmp.ge.s32.totalorder %v1831_v15, 1  ;;  %vm1894_vm14 = vcmp.le.s32.totalorder %v1831_v15, 16  ;;  %vm2975_vm12 = vcmask 31744  }
 0x156   : > { %2931 = vrot.lane.b32.xlu1 %v2542_v12, %s4257_s22  ;;  %v5199_v10 = vsel %vm1912_vm8, %v2186_v9, 0.0  ;;  %v2332_v44 = vrot.slane %v2318_v21, %v4394_v8  ;;  %v2504_v29 = vrot.slane %v5194_v30, 1  ;;  %v2545_v3 = vrot.slane %v5194_v30, 2  ;;  %vm1874_vm13 = vmand %vm5902_vm2, %vm1854_vm3 }
 0x157   : > { %v2505_v4 = vrot.slane %v5199_v10, 1  ;;  %v2546_v2 = vrot.slane %v5199_v10, 2  ;;  %vm1914_vm0 = vmand %vm1874_vm13, %vm1894_vm14  ;;  %v2234_v59 = vrot.slane %v1679_v36, %v4394_v8  ;;  %vm2992_vm13 = vcmask 64512  }
 0x158   : > { %vm1915_vm5 = vmand %vm1854_vm3, %vm1894_vm14  ;;  %v5275_v32 = vsel %vm1914_vm0, %v5043_v7, 0.0 }
 0x159   : > { %2603 = vrot.lane.b32.xlu0 %v2501_v14, %s4252_s13  ;;  %v2317_v14 = vcombine.low %v1756_v25, %v1764_v20  ;;  %v2547_v40 = vsel %vm5903_vm7, %v2545_v3, %v2546_v2  ;;  %vm1876_vm8 = vmand %vm1845_vm4, %vm1854_vm3  ;;  %v2509_v7 = vrot.slane %v5275_v32, 1 }
 0x15a   : > { %2745 = vrot.lane.b32.xlu1 %v2503_v63, %s4255_s18  ;;  %vm1916_vm9 = vmand %vm1876_vm8, %vm1894_vm14  ;;  %vm3009_vm14 = vcmask 97280   ;;  %vm3059_vm8 = vcmask 195584  }
 0x15b   : > { %v2325_v62 = vrot.slane %v2317_v14, %v4394_v8  ;;  %v5283_v14 = vsel %vm1915_vm5, %v5048_v38, 0.0  ;;  %vm3042_vm5 = vcmask 162816  }
 0x15c   : > { %v2510_v9 = vrot.slane %v5283_v14, 1 }
 0x15d   : > { %2791 = vrot.lane.b32.xlu0 %v2542_v12, %s5931_s28  ;;  %v2333_v33 = vcombine.low %v2325_v62, %v2332_v44 }
 0x15e   : > { %2933 = vrot.lane.b32.xlu1 %v2544_v34, %s4257_s22  ;;  %v2511_v44 = vsel %vm2483_vm15, %v2509_v7, %v2510_v9 }
 0x15f   : > { %v5218_v26 = vsel %vm1923_vm10, %v2333_v33, 0.0  ;;  %v2446_v33 = vsel %vm1916_vm9, %v2234_v59, 0.0 }
 0x160   : > { %v2568_v24 = vrot.slane %v5218_v26, 1  ;;  %v2573_v22 = vrot.slane %v5218_v26, 2  ;;  %v2553_v15 = vrot.slane %v2446_v33, 2 }
 0x161   : > { %2605 = vrot.lane.b32.xlu0 %v2503_v63, %s4252_s13  ;;  %v2506_v63 = vsel %vm2483_vm15, %v2504_v29, %v2505_v4 }
 0x162   : > { %2651 = vrot.lane.b32.xlu1 %v2542_v12, %s5932_s19  ;;  %v2443_v12 = vsel %vm1913_vm11, %v2193_v16, 0.0  ;;  %v5229_v54 = vsel %vm2483_vm15, %v2568_v24, %v2569_v1  ;;  %v5244_v1 = vsel %vm5903_vm7, %v2573_v22, %v2574_v58  ;;  %v2512_v16 = vrot.slane %v2446_v33, 1 }
 0x163   : > { %v2507_v19 = vrot.slane %v2443_v12, 1  ;;  %v2548_v13 = vrot.slane %v2443_v12, 2  ;;  %v2550_v24 = vrot.slane %v5275_v32, 2 }
 0x164   : > { %v2513_v3 = vsel %vm2483_vm15, %v2510_v9, %v2512_v16 }
 0x165   : > { %2793 = vrot.lane.b32.xlu0 %v2544_v34, %s5931_s28  ;;  %v2508_v25 = vsel %vm2483_vm15, %v2505_v4, %v2507_v19  ;;  %v2549_v18 = vsel %vm5903_vm7, %v2546_v2, %v2548_v13 }
 0x166   : > { %2839 = vrot.lane.b32.xlu1 %v5194_v30, %s4250_s27 }
 0x169   : > { %2653 = vrot.lane.b32.xlu0 %v2544_v34, %s5932_s19 }
 0x16a   : > { %2699 = vrot.lane.b32.xlu1 %v5194_v30, %s4254_s17 }
 0x16d   : > { %2841 = vrot.lane.b32.xlu0 %v5199_v10, %s4250_s27 }
 0x16e   : > { %2887 = vrot.lane.b32.xlu1 %v2506_v63, %s4251_s12 }
 0x171   : > { %2701 = vrot.lane.b32.xlu0 %v5199_v10, %s4254_s17 }
 0x172   : > { %2747 = vrot.lane.b32.xlu1 %v2506_v63, %s4255_s18 }
 0x174   : > { %v5246_v53 = vpop.permute.xlu0 %2859 }
 0x175   : > { %2889 = vrot.lane.b32.xlu0 %v2508_v25, %s4251_s12 }
 0x176   : > { %2935 = vrot.lane.b32.xlu1 %v2547_v40, %s4257_s22 }
 0x178   : > { %v5248_v43 = vpop.permute.xlu1 %2861 }
 0x179   : > { %2607 = vrot.lane.b32.xlu0 %v2506_v63, %s4252_s13  ;;  %v2551_v63 = vrot.slane %v5283_v14, 2 }
 0x17a   : > { %2749 = vrot.lane.b32.xlu1 %v2508_v25, %s4255_s18 }
 0x17b   : > { %v5253_v45 = vpop.permute.xlu0 %2907  ;;  %v2552_v2 = vsel %vm5903_vm7, %v2550_v24, %v2551_v63  ;;  %v2554_v36 = vsel %vm5903_vm7, %v2551_v63, %v2553_v15 }
 0x17c   : > { %v5255_v20 = vpop.permute.xlu1 %2909 }
 0x17d   : > { %2795 = vrot.lane.b32.xlu0 %v2547_v40, %s5931_s28 }
 0x17e   : > { %2937 = vrot.lane.b32.xlu1 %v2549_v18, %s4257_s22 }
 0x17f   : > { %v2592_v58 = vpop.permute.xlu0 %2591 }
 0x180   : > { %v5263_v11 = vpop.permute.xlu1 %2639  ;;  %v2976_v7 = vsel %vm2975_vm12, %v4721_v56, %v2592_v58 }
 0x181   : > { %2609 = vrot.lane.b32.xlu0 %v2508_v25, %s4252_s13 }
 0x182   : > { %2655 = vrot.lane.b32.xlu1 %v2547_v40, %s5932_s19  ;;  %v1832_v40 = vadd.s32 6, %v4594_v23 }
 0x183   : > { %v5268_v34 = vpop.permute.xlu0 %2593 }
 0x184   : > { %v5272_v49 = vpop.permute.xlu1 %2641  ;;  %vm1855_vm10 = vcmp.ge.s32.totalorder %v1832_v40, 1  ;;  %vm1895_vm3 = vcmp.le.s32.totalorder %v1832_v40, 16 }
 0x185   : > { %2797 = vrot.lane.b32.xlu0 %v2549_v18, %s5931_s28  ;;  %vm1877_vm11 = vmand %vm5902_vm2, %vm1855_vm10  ;;  %vm3122_vm2 = vcmask 293888  }
 0x186   : > { %2843 = vrot.lane.b32.xlu1 %v5275_v32, %s4250_s27  ;;  %vm1917_vm0 = vmand %vm1877_vm11, %vm1895_vm3  ;;  %vm3093_vm11 = vcmask 261120  }
 0x187   : > { %v2688_v28 = vpop.permute.xlu0 %2687  ;;  %vm1918_vm9 = vmand %vm1855_vm10, %vm1895_vm3  ;;  %v5347_v24 = vsel %vm1917_vm0, %v5061_v46, 0.0 }
 0x188   : > { %v5285_v21 = vpop.permute.xlu1 %2689  ;;  %vm1879_vm0 = vmand %vm1845_vm4, %vm1855_vm10 }
 0x189   : > { %2657 = vrot.lane.b32.xlu0 %v2549_v18, %s5932_s19  ;;  %vm1919_vm10 = vmand %vm1879_vm0, %vm1895_vm3 }
 0x18a   : > { %2703 = vrot.lane.b32.xlu1 %v5275_v32, %s4254_s17 }
 0x18b   : > { %v2736_v38 = vpop.permute.xlu0 %2735 }
 0x18c   : > { %v5297_v62 = vpop.permute.xlu1 %2595 }
 0x18d   : > { %2845 = vrot.lane.b32.xlu0 %v5283_v14, %s4250_s27 }
 0x18e   : > { %2891 = vrot.lane.b32.xlu1 %v2511_v44, %s4251_s12 }
 0x18f   : > { %v5303_v29 = vpop.permute.xlu0 %2737 }
 0x190   : > { %v2784_v4 = vpop.permute.xlu1 %2783 }
 0x191   : > { %2705 = vrot.lane.b32.xlu0 %v5283_v14, %s4254_s17 }
 0x192   : > { %2751 = vrot.lane.b32.xlu1 %v2511_v44, %s4255_s18 }
 0x193   : > { %v5310_v12 = vpop.permute.xlu0 %2597 }
 0x194   : > { %v5312_v19 = vpop.permute.xlu1 %2643 }
 0x195   : > { %2893 = vrot.lane.b32.xlu0 %v2513_v3, %s4251_s12 }
 0x196   : > { %2939 = vrot.lane.b32.xlu1 %v2552_v2, %s4257_s22 }
 0x197   : > { %v2786_v22 = vpop.permute.xlu0 %2785 }
 0x198   : > { %v2832_v25 = vpop.permute.xlu1 %2831 }
 0x199   : > { %2611 = vrot.lane.b32.xlu0 %v2511_v44, %s4252_s13  ;;  %v2993_v44 = vsel %vm2992_vm13, %v2976_v7, %v5263_v11 }
 0x19a   : > { %2753 = vrot.lane.b32.xlu1 %v2513_v3, %s4255_s18  ;;  %v3010_v33 = vsel %vm3009_vm14, %v2993_v44, %v2688_v28  ;;  %v5355_v28 = vsel %vm1918_vm9, %v5079_v61, 0.0  ;;  %v2514_v61 = vrot.slane %v5347_v24, 1  ;;  %vm5933_vm9 = vcmp.ge.s32.totalorder %v4384_v6, 1 }
 0x19b   : > { %v5321_v13 = vpop.permute.xlu0 %2645  ;;  %v3026_v58 = vsel %vm1170_vm1, %v3010_v33, %v2736_v38  ;;  %v2977_v38 = vsel %vm2975_vm12, %v4725_v57, %v5268_v34  ;;  %v2515_v57 = vrot.slane %v5355_v28, 1 }
 0x19c   : > { %v5323_v18 = vpop.permute.xlu1 %2691  ;;  %v3043_v63 = vsel %vm3042_vm5, %v3026_v58, %v2784_v4  ;;  %v2994_v34 = vsel %vm2992_vm13, %v2977_v38, %v5272_v49 }
 0x19d   : > { %2799 = vrot.lane.b32.xlu0 %v2552_v2, %s5931_s28  ;;  %v3060_v11 = vsel %vm3059_vm8, %v3043_v63, %v2832_v25  ;;  %v2275_v25 = vrot.slane %v4914_v35, %v4394_v8  ;;  %v3011_v15 = vsel %vm3009_vm14, %v2994_v34, %v5285_v21  ;;  %v2516_v49 = vsel %vm2483_vm15, %v2514_v61, %v2515_v57 }
 0x19e   : > { %2941 = vrot.lane.b32.xlu1 %v2554_v36, %s4257_s22  ;;  %v3027_v7 = vsel %vm1170_vm1, %v3011_v15, %v5303_v29  ;;  %v2555_v29 = vrot.slane %v5347_v24, 2 }
 0x19f   : > { %v2834_v9 = vpop.permute.xlu0 %2833  ;;  %v2449_v44 = vsel %vm1919_vm10, %v2275_v25, 0.0  ;;  %v1833_v25 = vadd.s32 7, %v4594_v23  ;;  %v2978_v23 = vsel %vm2975_vm12, %v4792_v42, %v5297_v62  ;;  %v1748_v62 = vcombine.high %v4996_v31, %v4996_v31 }
 0x1a0   : > { %v2880_v59 = vpop.permute.xlu1 %2879  ;;  %v2558_v61 = vrot.slane %v2449_v44, 2 }
 0x1a1   : > { %2613 = vrot.lane.b32.xlu0 %v2513_v3, %s4252_s13  ;;  %v3077_v46 = vsel %vm3076_vm6, %v3060_v11, %v2880_v59  ;;  %v3044_v59 = vsel %vm3042_vm5, %v3027_v7, %v2786_v22  ;;  %v2517_v11 = vrot.slane %v2449_v44, 1  ;;  %v2556_v22 = vrot.slane %v5355_v28, 2 }
 0x1a2   : > { %2659 = vrot.lane.b32.xlu1 %v2552_v2, %s5932_s19  ;;  %v3061_v40 = vsel %vm3059_vm8, %v3044_v59, %v2834_v9  ;;  %vm1856_vm3 = vcmp.ge.s32.totalorder %v1833_v25, 1  ;;  %vm1896_vm10 = vcmp.le.s32.totalorder %v1833_v25, 16 }
 0x1a3   : > { %v5339_v16 = vpop.permute.xlu0 %2693  ;;  %vm1880_vm0 = vmand %vm5933_vm9, %vm1856_vm3 }
 0x1a4   : > { %v5341_v56 = vpop.permute.xlu1 %2739  ;;  %vm1921_vm9 = vmand %vm1856_vm3, %vm1896_vm10 }
 0x1a5   : > { %2801 = vrot.lane.b32.xlu0 %v2554_v36, %s5931_s28 }
 0x1a6   : > { %2847 = vrot.lane.b32.xlu1 %v5347_v24, %s4250_s27 }
 0x1a7   : > { %v2882_v3 = vpop.permute.xlu0 %2881 }
 0x1a8   : > { %v2928_v4 = vpop.permute.xlu1 %2927  ;;  %v3078_v21 = vsel %vm3076_vm6, %v3061_v40, %v2882_v3  ;;  %v2557_v3 = vsel %vm5903_vm7, %v2555_v29, %v2556_v22 }
 0x1a9   : > { %v3094_v2 = vsel %vm3093_vm11, %v3077_v46, %v2928_v4  ;;  %2661 = vrot.lane.b32.xlu0 %v2554_v36, %s5932_s19  ;;  %v2518_v46 = vsel %vm2483_vm15, %v2515_v57, %v2517_v11  ;;  %v2559_v57 = vsel %vm5903_vm7, %v2556_v22, %v2558_v61  ;;  %vm1920_vm7 = vmand %vm1880_vm0, %vm1896_vm10 }
 0x1aa   : > { %3963 = vmatprep.mubr.msk.f32.mxu1 %vm3122_vm2, %v3094_v2  ;;  %2707 = vrot.lane.b32.xlu1 %v5347_v24, %s4254_s17  ;;  %vm1882_vm0 = vmand %vm1845_vm4, %vm1856_vm3 }
 0x1ab   : > { %v5378_v35 = vpop.permute.xlu0 %2599  ;;  %vm1922_vm4 = vmand %vm1882_vm0, %vm1896_vm10  ;;  %vm5936_vm10 = vcmask 1043456  }
 0x1ac   : > { %v5380_v36 = vpop.permute.xlu1 %2741 }
 0x1ad   : > { %2849 = vrot.lane.b32.xlu0 %v5355_v28, %s4250_s27 }
 0x1ae   : > { %2895 = vrot.lane.b32.xlu1 %v2516_v49, %s4251_s12 }
 0x1af   : > { %v2788_v33 = vpop.permute.xlu0 %2787 }
 0x1b0   : > { %v2930_v58 = vpop.permute.xlu1 %2929 }
 0x1b1   : > { %v3095_v63 = vsel %vm3093_vm11, %v3078_v21, %v2930_v58  ;;  %2709 = vrot.lane.b32.xlu0 %v5355_v28, %s4254_s17  ;;  %v5442_v21 = vsel %vm1920_vm7, %v5094_v37, 0.0  ;;  %v5448_v58 = vsel %vm1921_vm9, %v5118_v0, 0.0  ;;  %v2316_v37 = vrot.slane %v1748_v62, %v4394_v8  ;;  %vm5937_vm9 = vmmov %vm5936_vm10 }
 0x1b2   : > { %3964 = vmatmul.mubr.msk.f32.vlgmr.msra.gmra.mxu1 %vm3122_vm2, %v3095_v63  ;;  %2755 = vrot.lane.b32.xlu1 %v2516_v49, %s4255_s18  ;;  %v2519_v0 = vrot.slane %v5442_v21, 1  ;;  %v2520_v29 = vrot.slane %v5448_v58, 1  ;;  %vm5934_vm7 = vcmask 1045504  }
 0x1b3   : > { %v5398_v9 = vpop.permute.xlu0 %2601  ;;  %vm5935_vm3 = vmmov %vm5934_vm7 }
 0x1b4   : > { %v5400_v38 = vpop.permute.xlu1 %2647  ;;  %vm5939_vm0 = vmmov %vm5935_vm3 }
 0x1b5   : > { %2897 = vrot.lane.b32.xlu0 %v2518_v46, %s4251_s12 }
 0x1b6   : > { %2943 = vrot.lane.b32.xlu1 %v2557_v3, %s4257_s22 }
 0x1b7   : > { %v2790_v4 = vpop.permute.xlu0 %2789 }
 0x1b8   : > { %v2836_v2 = vpop.permute.xlu1 %2835 }
 0x1b9   : > { %2615 = vrot.lane.b32.xlu0 %v2516_v49, %s4252_s13  ;;  %v2995_v49 = vsel %vm2992_vm13, %v2978_v23, %v5312_v19 }
 0x1ba   : > { %2757 = vrot.lane.b32.xlu1 %v2518_v46, %s4255_s18  ;;  %v3012_v44 = vsel %vm3009_vm14, %v2995_v49, %v5323_v18 }
 0x1bb   : > { %v5409_v34 = vpop.permute.xlu0 %2649  ;;  %v3028_v42 = vsel %vm1170_vm1, %v3012_v44, %v5341_v56 }
 0x1bc   : > { %v5411_v15 = vpop.permute.xlu1 %2695  ;;  %v3045_v19 = vsel %vm3042_vm5, %v3028_v42, %v2788_v33  ;;  %v2979_v33 = vsel %vm2975_vm12, %v4799_v50, %v5310_v12 }
 0x1bd   : > { %2803 = vrot.lane.b32.xlu0 %v2557_v3, %s5931_s28  ;;  %v3062_v18 = vsel %vm3059_vm8, %v3045_v19, %v2836_v2  ;;  %v2996_v41 = vsel %vm2992_vm13, %v2979_v33, %v5321_v13  ;;  %v2521_v13 = vsel %vm2483_vm15, %v2519_v0, %v2520_v29 }
 0x1be   : > { %2945 = vrot.lane.b32.xlu1 %v2559_v57, %s4257_s22  ;;  %v3013_v8 = vsel %vm3009_vm14, %v2996_v41, %v5339_v16 }
 0x1bf   : > { %v2838_v7 = vpop.permute.xlu0 %2837  ;;  %v3029_v22 = vsel %vm1170_vm1, %v3013_v8, %v5380_v36  ;;  %v2560_v36 = vrot.slane %v5442_v21, 2 }
 0x1c0   : > { %v2884_v59 = vpop.permute.xlu1 %2883 }
 0x1c1   : > { %2617 = vrot.lane.b32.xlu0 %v2518_v46, %s4252_s13  ;;  %v3079_v56 = vsel %vm3076_vm6, %v3062_v18, %v2884_v59  ;;  %v3046_v46 = vsel %vm3042_vm5, %v3029_v22, %v2790_v4  ;;  %v2561_v4 = vrot.slane %v5448_v58, 2 }
 0x1c2   : > { %2663 = vrot.lane.b32.xlu1 %v2557_v3, %s5932_s19  ;;  %v2452_v3 = vsel %vm1922_vm4, %v2316_v37, 0.0  ;;  %v3063_v2 = vsel %vm3059_vm8, %v3046_v46, %v2838_v7  ;;  %v2980_v37 = vsel %vm2975_vm12, %v4866_v52, %v5378_v35 }
 0x1c3   : > { %v5429_v40 = vpop.permute.xlu0 %2697  ;;  %v2522_v59 = vrot.slane %v2452_v3, 1  ;;  %v2562_v44 = vsel %vm5934_vm7, %v2560_v36, %v2561_v4  ;;  %v2563_v19 = vrot.slane %v2452_v3, 2  ;;  %v2997_v33 = vsel %vm2992_vm13, %v2980_v37, %v5400_v38 }
 0x1c4   : > { %v5431_v6 = vpop.permute.xlu1 %2743  ;;  %v3014_v0 = vsel %vm3009_vm14, %v2997_v33, %v5411_v15 }
 0x1c5   : > { %2805 = vrot.lane.b32.xlu0 %v2559_v57, %s5931_s28  ;;  %v2523_v49 = vsel %vm2483_vm15, %v2520_v29, %v2522_v59  ;;  %v3030_v8 = vsel %vm1170_vm1, %v3014_v0, %v5431_v6  ;;  %v3336_v59 = vld [vmem:[%s5891_s3] sm:$0xf] }
 0x1c6   : > { %2851 = vrot.lane.b32.xlu1 %v5442_v21, %s4250_s27  ;;  %3987 = vmatprep.subr.msk.mxu1 %vm5936_vm10, %v3336_v59 }
 0x1c7   : > { %v2886_v63 = vpop.permute.xlu0 %2885  ;;  %3988 = vmatpush3.msk.msra.mxu1 %vm5937_vm9, %v3336_v59 }
 0x1c8   : > { %v2932_v11 = vpop.permute.xlu1 %2931  ;;  %v3080_v16 = vsel %vm3076_vm6, %v3063_v2, %v2886_v63  ;;  %v2564_v63 = vsel %vm5935_vm3, %v2561_v4, %v2563_v19 }
 0x1c9   : > { %v3096_v31 = vsel %vm3093_vm11, %v3079_v56, %v2932_v11  ;;  %2665 = vrot.lane.b32.xlu0 %v2559_v57, %s5932_s19 }
 0x1ca   : > { %3966 = vmatprep.mubr.msk.f32.mxu1 %vm3122_vm2, %v3096_v31  ;;  %2711 = vrot.lane.b32.xlu1 %v5442_v21, %s4254_s17 }
 0x1cb   : > { %v5470_v50 = vpop.permute.xlu0 %2603 }
 0x1cc   : > { %v2746_v12 = vpop.permute.xlu1 %2745  ;;  %v2982_v19 = vsel %vm2975_vm12, %v5057_v47, %v5470_v50 }
 0x1cd   : > { %2853 = vrot.lane.b32.xlu0 %v5448_v58, %s4250_s27 }
 0x1ce   : > { %2899 = vrot.lane.b32.xlu1 %v2521_v13, %s4251_s12 }
 0x1cf   : > { %v2792_v25 = vpop.permute.xlu0 %2791 }
 0x1d0   : > { %v2934_v61 = vpop.permute.xlu1 %2933  ;;  %v3047_v22 = vsel %vm3042_vm5, %v3030_v8, %v2792_v25 }
 0x1d1   : > { %v3097_v57 = vsel %vm3093_vm11, %v3080_v16, %v2934_v61  ;;  %2713 = vrot.lane.b32.xlu0 %v5448_v58, %s4254_s17 }
 0x1d2   : > { %3967 = vmatmul.mubr.msk.f32.gmra.mxu1 %vm3122_vm2, %v3097_v57  ;;  %2759 = vrot.lane.b32.xlu1 %v2521_v13, %s4255_s18 }
 0x1d3   : > { %v5488_v7 = vpop.permute.xlu0 %2605 }
 0x1d4   : > { %v5490_v23 = vpop.permute.xlu1 %2651 }
 0x1d5   : > { %2901 = vrot.lane.b32.xlu0 %v2523_v49, %s4251_s12 }
 0x1d6   : > { %2947 = vrot.lane.b32.xlu1 %v2562_v44, %s4257_s22 }
 0x1d7   : > { %v2794_v42 = vpop.permute.xlu0 %2793 }
 0x1d8   : > { %v2840_v62 = vpop.permute.xlu1 %2839 }
 0x1d9   : > { %2619 = vrot.lane.b32.xlu0 %v2521_v13, %s4252_s13  ;;  %v3064_v52 = vsel %vm3059_vm8, %v3047_v22, %v2840_v62  ;;  %v2981_v13 = vsel %vm2975_vm12, %v4873_v55, %v5398_v9 }
 0x1da   : > { %2761 = vrot.lane.b32.xlu1 %v2523_v49, %s4255_s18  ;;  %v2998_v6 = vsel %vm2992_vm13, %v2981_v13, %v5409_v34 }
 0x1db   : > { %v5498_v18 = vpop.permute.xlu0 %2653  ;;  %v3015_v3 = vsel %vm3009_vm14, %v2998_v6, %v5429_v40 }
 0x1dc   : > { %v5500_v56 = vpop.permute.xlu1 %2699  ;;  %v3031_v25 = vsel %vm1170_vm1, %v3015_v3, %v2746_v12 }
 0x1dd   : > { %2807 = vrot.lane.b32.xlu0 %v2562_v44, %s5931_s28  ;;  %v3048_v55 = vsel %vm3042_vm5, %v3031_v25, %v2794_v42  ;;  %v5938_v42 = vld [vmem:[#allocation5_spill] sm:$0xff] }
 0x1de   : > { %2949 = vrot.lane.b32.xlu1 %v2564_v63, %s4257_s22  ;;  %v2589_v62 = vrot.slane %v5938_v42, 2 }
 0x1df   : > { %v2842_v11 = vpop.permute.xlu0 %2841 }
 0x1e0   : > { %v2888_v31 = vpop.permute.xlu1 %2887  ;;  %v3065_v9 = vsel %vm3059_vm8, %v3048_v55, %v2842_v11 }
 0x1e1   : > { %2621 = vrot.lane.b32.xlu0 %v2523_v49, %s4252_s13  ;;  %v3081_v35 = vsel %vm3076_vm6, %v3064_v52, %v2888_v31 }
 0x1e2   : > { %2667 = vrot.lane.b32.xlu1 %v2562_v44, %s5932_s19 }
 0x1e3   : > { %v5514_v29 = vpop.permute.xlu0 %2701 }
 0x1e4   : > { %v2748_v41 = vpop.permute.xlu1 %2747 }
 0x1e5   : > { %2809 = vrot.lane.b32.xlu0 %v2564_v63, %s5931_s28 }
 0x1e6   : > { %2855 = vrot.lane.b32.xlu1 %v5218_v26, %s4250_s27 }
 0x1e7   : > { %v2890_v38 = vpop.permute.xlu0 %2889 }
 0x1e8   : > { %v2936_v46 = vpop.permute.xlu1 %2935 }
 0x1e9   : > { %v3098_v15 = vsel %vm3093_vm11, %v3081_v35, %v2936_v46  ;;  %2669 = vrot.lane.b32.xlu0 %v2564_v63, %s5932_s19 }
 0x1ea   : > { %3969 = vmatprep.mubr.msk.f32.mxu1 %vm3122_vm2, %v3098_v15  ;;  %2715 = vrot.lane.b32.xlu1 %v5218_v26, %s4254_s17  ;;  %v3082_v26 = vsel %vm3076_vm6, %v3065_v9, %v2890_v38 }
 0x1eb   : > { %v5536_v2 = vpop.permute.xlu0 %2607 }
 0x1ec   : > { %v2750_v16 = vpop.permute.xlu1 %2749  ;;  %v2984_v25 = vsel %vm2975_vm12, %v5194_v30, %v5536_v2 }
 0x1ed   : > { %2857 = vrot.lane.b32.xlu0 %v5141_v39, %s4250_s27 }
 0x1ee   : > { %2903 = vrot.lane.b32.xlu1 %v5229_v54, %s4251_s12 }
 0x1ef   : > { %v2796_v34 = vpop.permute.xlu0 %2795 }
 0x1f0   : > { %v2938_v61 = vpop.permute.xlu1 %2937 }
 0x1f1   : > { %v3099_v40 = vsel %vm3093_vm11, %v3082_v26, %v2938_v61  ;;  %2717 = vrot.lane.b32.xlu0 %v5141_v39, %s4254_s17 }
 0x1f2   : > { %3970 = vmatmul.mubr.msk.f32.gmra.mxu1 %vm3122_vm2, %v3099_v40  ;;  %2763 = vrot.lane.b32.xlu1 %v5229_v54, %s4255_s18 }
 0x1f3   : > { %v5552_v12 = vpop.permute.xlu0 %2609 }
 0x1f4   : > { %v2656_v57 = vpop.permute.xlu1 %2655  ;;  %v2985_v30 = vsel %vm2975_vm12, %v5199_v10, %v5552_v12 }
 0x1f5   : > { %2905 = vrot.lane.b32.xlu0 %v5157_v51, %s4251_s12  ;;  %v3001_v55 = vsel %vm2992_vm13, %v2984_v25, %v2656_v57 }
 0x1f6   : > { %2951 = vrot.lane.b32.xlu1 %v5244_v1, %s4257_s22 }
 0x1f7   : > { %v2798_v36 = vpop.permute.xlu0 %2797 }
 0x1f8   : > { %v2844_v39 = vpop.permute.xlu1 %2843 }
 0x1f9   : > { %2765 = vrot.lane.b32.xlu0 %v5157_v51, %s4255_s18  ;;  %v2590_v51 = vsel %vm5939_vm0, %v2587_v17, %v2589_v62  ;;  %s295_s18 = sand.u32 1, %s4221_s25  }
 0x1fa   : > { %2811 = vrot.lane.b32.xlu1 %v5244_v1, %s5931_s28  ;;  %v2999_v1 = vsel %vm2992_vm13, %v2982_v19, %v5490_v23  ;;  %v2983_v23 = vsel %vm2975_vm12, %v5059_v27, %v5488_v7  ;;  %s3744_s9 = sshll.u32 %s295_s18, 7 }
 0x1fb   : > { %v2658_v54 = vpop.permute.xlu0 %2657 }
 0x1fc   : > { %v2704_v4 = vpop.permute.xlu1 %2703  ;;  %v3002_v2 = vsel %vm2992_vm13, %v2985_v30, %v2658_v54 }
 0x1fd   : > { %2953 = vrot.lane.b32.xlu0 %v5162_v60, %s4257_s22  ;;  %v3018_v26 = vsel %vm3009_vm14, %v3001_v55, %v2704_v4 }
 0x1fe   : > { %2813 = vrot.lane.b32.xlu1 %v5162_v60, %s5931_s28  ;;  %v3016_v60 = vsel %vm3009_vm14, %v2999_v1, %v5500_v56  ;;  %v3000_v56 = vsel %vm2992_vm13, %v2983_v23, %v5498_v18  ;;  %s5742_s28 = scalar_lea.vmem [#allocation2], %s3744_s9  ;;  %s4157_s9 = sshll.u32 %s4258_s23, 4  ;;  %s4158_s9 = int_to_ptr.vmem [resolvable:$false] %s4157_s9 }
 0x1ff   : > { %v2846_v49 = vpop.permute.xlu0 %2845  ;;  %v3032_v31 = vsel %vm1170_vm1, %v3016_v60, %v2748_v41  ;;  %v3017_v33 = vsel %vm3009_vm14, %v3000_v56, %v5514_v29  ;;  %s3660_s27 = sshll.u32 %s5742_s28, 4  ;;  %s5830_s27 = int_to_ptr.vmem [resolvable:$true] %s3660_s27 }
 0x200   : > { %v2892_v44 = vpop.permute.xlu1 %2891  ;;  %v3049_v47 = vsel %vm3042_vm5, %v3032_v31, %v2796_v34  ;;  %v3033_v8 = vsel %vm1170_vm1, %v3017_v33, %v2750_v16  ;;  %p4160_p2 = scmp.lt.s32.totalorder %s5830_s27, %s4158_s9 }
 0x201   : > { %2955 = vrot.lane.b32.xlu0 %v5148_v5, %s4257_s22  ;;  %v3066_v5 = vsel %vm3059_vm8, %v3049_v47, %v2844_v39  ;;  %v3050_v22 = vsel %vm3042_vm5, %v3033_v8, %v2798_v36 }
 0x202   : > { %2957 = vrot.lane.b32.xlu1 %v2590_v51, %s4257_s22  ;;  %v3083_v48 = vsel %vm3076_vm6, %v3066_v5, %v2892_v44  ;;  %v3067_v52 = vsel %vm3059_vm8, %v3050_v22, %v2846_v49  ;;  %s4153_s22 = scalar_lea.vmem %s5830_s27, 2048 }
 0x203   : > { %v2706_v63 = vpop.permute.xlu0 %2705  ;;  %p4154_p13 = scmp.ne.s32.totalorder %s5830_s27, %s4153_s22 }
 0x204   : > { %v2752_v11 = vpop.permute.xlu1 %2751  ;;  %v3019_v4 = vsel %vm3009_vm14, %v3002_v2, %v2706_v63 }
 0x205   : > { %v3034_v61 = vsel %vm1170_vm1, %v3018_v26, %v2752_v11  ;;  %p4155_p0 = pnand %p4154_p13, %p4353_p5 }
 0x207   : > { %v2894_v50 = vpop.permute.xlu0 %2893  ;;  %p4156_p1 = pneg %p4155_p0 }
 0x208   : > { %v2940_v17 = vpop.permute.xlu1 %2939  ;;  %v3084_v35 = vsel %vm3076_vm6, %v3067_v52, %v2894_v50 }
 0x209   : > { %v3100_v37 = vsel %vm3093_vm11, %v3083_v48, %v2940_v17 }
 0x20a   : > { %3972 = vmatprep.mubr.msk.f32.mxu1 %vm3122_vm2, %v3100_v37 }
 0x20b   : > { %v2612_v0 = vpop.permute.xlu0 %2611 }
 0x20c   : > { %v2754_v41 = vpop.permute.xlu1 %2753  ;;  %v2986_v17 = vsel %vm2975_vm12, %v5275_v32, %v2612_v0 }
 0x20d   : > { %v3035_v62 = vsel %vm1170_vm1, %v3019_v4, %v2754_v41 }
 0x20f   : > { %v2800_v38 = vpop.permute.xlu0 %2799 }
 0x210   : > { %v2942_v27 = vpop.permute.xlu1 %2941  ;;  %v3051_v40 = vsel %vm3042_vm5, %v3034_v61, %v2800_v38 }
 0x211   : > { %v3101_v7 = vsel %vm3093_vm11, %v3084_v35, %v2942_v27 }
 0x212   : > { %3973 = vmatmul.mubr.msk.f32.gmra.mxu1 %vm3122_vm2, %v3101_v7 }
 0x213   : > { %v2614_v18 = vpop.permute.xlu0 %2613 }
 0x214   : > { %v2660_v46 = vpop.permute.xlu1 %2659  ;;  %v2987_v32 = vsel %vm2975_vm12, %v5283_v14, %v2614_v18 }
 0x215   : > { %v3003_v37 = vsel %vm2992_vm13, %v2986_v17, %v2660_v46 }
 0x217   : > { %v2802_v15 = vpop.permute.xlu0 %2801 }
 0x218   : > { %v2848_v29 = vpop.permute.xlu1 %2847  ;;  %v3052_v19 = vsel %vm3042_vm5, %v3035_v62, %v2802_v15 }
 0x219   : > { %v3068_v59 = vsel %vm3059_vm8, %v3051_v40, %v2848_v29 }
 0x21b   : > { %v2662_v13 = vpop.permute.xlu0 %2661 }
 0x21c   : > { %v2708_v6 = vpop.permute.xlu1 %2707  ;;  %v3004_v0 = vsel %vm2992_vm13, %v2987_v32, %v2662_v13 }
 0x21d   : > { %v3020_v56 = vsel %vm3009_vm14, %v3003_v37, %v2708_v6 }
 0x21f   : > { %v2850_v3 = vpop.permute.xlu0 %2849 }
 0x220   : > { %v2896_v16 = vpop.permute.xlu1 %2895  ;;  %v3069_v51 = vsel %vm3059_vm8, %v3052_v19, %v2850_v3 }
 0x221   : > { %v3085_v39 = vsel %vm3076_vm6, %v3068_v59, %v2896_v16 }
 0x223   : > { %v2710_v9 = vpop.permute.xlu0 %2709 }
 0x224   : > { %v2756_v34 = vpop.permute.xlu1 %2755  ;;  %v3021_v46 = vsel %vm3009_vm14, %v3004_v0, %v2710_v9 }
 0x225   : > { %v3036_v41 = vsel %vm1170_vm1, %v3020_v56, %v2756_v34 }
 0x227   : > { %v2898_v36 = vpop.permute.xlu0 %2897 }
 0x228   : > { %v2944_v49 = vpop.permute.xlu1 %2943  ;;  %v3086_v60 = vsel %vm3076_vm6, %v3069_v51, %v2898_v36 }
 0x229   : > { %v3102_v44 = vsel %vm3093_vm11, %v3085_v39, %v2944_v49 }
 0x22a   : > { %3975 = vmatprep.mubr.msk.f32.mxu1 %vm3122_vm2, %v3102_v44 }
 0x22b   : > { %v2616_v57 = vpop.permute.xlu0 %2615 }
 0x22c   : > { %v2758_v42 = vpop.permute.xlu1 %2757  ;;  %v2988_v36 = vsel %vm2975_vm12, %v5347_v24, %v2616_v57 }
 0x22d   : > { %v3037_v29 = vsel %vm1170_vm1, %v3021_v46, %v2758_v42 }
 0x22f   : > { %v2804_v1 = vpop.permute.xlu0 %2803 }
 0x230   : > { %v2946_v11 = vpop.permute.xlu1 %2945  ;;  %v3053_v8 = vsel %vm3042_vm5, %v3036_v41, %v2804_v1 }
 0x231   : > { %v3103_v10 = vsel %vm3093_vm11, %v3086_v60, %v2946_v11 }
 0x232   : > { %3976 = vmatmul.mubr.msk.f32.gmra.mxu1 %vm3122_vm2, %v3103_v10 }
 0x233   : > { %v2618_v12 = vpop.permute.xlu0 %2617 }
 0x234   : > { %v2664_v54 = vpop.permute.xlu1 %2663  ;;  %v2989_v1 = vsel %vm2975_vm12, %v5355_v28, %v2618_v12 }
 0x235   : > { %v3005_v39 = vsel %vm2992_vm13, %v2988_v36, %v2664_v54 }
 0x237   : > { %v2806_v31 = vpop.permute.xlu0 %2805 }
 0x238   : > { %v2852_v47 = vpop.permute.xlu1 %2851  ;;  %v3054_v6 = vsel %vm3042_vm5, %v3037_v29, %v2806_v31 }
 0x239   : > { %v3070_v22 = vsel %vm3059_vm8, %v3053_v8, %v2852_v47 }
 0x23b   : > { %v2666_v63 = vpop.permute.xlu0 %2665 }
 0x23c   : > { %v2712_v5 = vpop.permute.xlu1 %2711  ;;  %v3006_v60 = vsel %vm2992_vm13, %v2989_v1, %v2666_v63 }
 0x23d   : > { %v3022_v44 = vsel %vm3009_vm14, %v3005_v39, %v2712_v5 }
 0x23f   : > { %v2854_v48 = vpop.permute.xlu0 %2853 }
 0x240   : > { %v2900_v50 = vpop.permute.xlu1 %2899  ;;  %v3071_v3 = vsel %vm3059_vm8, %v3054_v6, %v2854_v48 }
 0x241   : > { %v3087_v35 = vsel %vm3076_vm6, %v3070_v22, %v2900_v50 }
 0x243   : > { %v2714_v23 = vpop.permute.xlu0 %2713 }
 0x244   : > { %v2760_v33 = vpop.permute.xlu1 %2759  ;;  %v3023_v10 = vsel %vm3009_vm14, %v3006_v60, %v2714_v23 }
 0x245   : > { %v3038_v2 = vsel %vm1170_vm1, %v3022_v44, %v2760_v33 }
 0x247   : > { %v2902_v52 = vpop.permute.xlu0 %2901 }
 0x248   : > { %v2948_v38 = vpop.permute.xlu1 %2947  ;;  %v3088_v25 = vsel %vm3076_vm6, %v3071_v3, %v2902_v52  ;;  %v5683_v52 = vld [vmem:[%s5893_s5] ss:$0 sm:$0xff] }
 0x249   : > { %v3104_v27 = vsel %vm3093_vm11, %v3087_v35, %v2948_v38 }
 0x24a   : > { %3978 = vmatprep.mubr.msk.f32.mxu1 %vm3122_vm2, %v3104_v27 }
 0x24b   : > { %v2620_v7 = vpop.permute.xlu0 %2619 }
 0x24c   : > { %v2762_v15 = vpop.permute.xlu1 %2761  ;;  %v2990_v24 = vsel %vm2975_vm12, %v5442_v21, %v2620_v7 }
 0x24d   : > { %v3039_v47 = vsel %vm1170_vm1, %v3023_v10, %v2762_v15 }
 0x24f   : > { %v2808_v16 = vpop.permute.xlu0 %2807 }
 0x250   : > { %v2950_v55 = vpop.permute.xlu1 %2949  ;;  %v3055_v4 = vsel %vm3042_vm5, %v3038_v2, %v2808_v16 }
 0x251   : > { %v3105_v14 = vsel %vm3093_vm11, %v3088_v25, %v2950_v55 }
 0x252   : > { %3979 = vmatmul.mubr.msk.f32.gmra.mxu1 %vm3122_vm2, %v3105_v14 }
 0x253   : > { %v2622_v18 = vpop.permute.xlu0 %2621 }
 0x254   : > { %v2668_v13 = vpop.permute.xlu1 %2667  ;;  %v2991_v21 = vsel %vm2975_vm12, %v5448_v58, %v2622_v18 }
 0x255   : > { %v3007_v11 = vsel %vm2992_vm13, %v2990_v24, %v2668_v13 }
 0x257   : > { %v2810_v26 = vpop.permute.xlu0 %2809 }
 0x258   : > { %v2856_v34 = vpop.permute.xlu1 %2855  ;;  %v3056_v5 = vsel %vm3042_vm5, %v3039_v47, %v2810_v26 }
 0x259   : > { %v3072_v42 = vsel %vm3059_vm8, %v3055_v4, %v2856_v34 }
 0x25b   : > { %v2670_v9 = vpop.permute.xlu0 %2669 }
 0x25c   : > { %v2716_v61 = vpop.permute.xlu1 %2715  ;;  %v3008_v48 = vsel %vm2992_vm13, %v2991_v21, %v2670_v9 }
 0x25d   : > { %v3024_v54 = vsel %vm3009_vm14, %v3007_v11, %v2716_v61 }
 0x25f   : > { %v2858_v40 = vpop.permute.xlu0 %2857 }
 0x260   : > { %v2904_v59 = vpop.permute.xlu1 %2903  ;;  %v3073_v50 = vsel %vm3059_vm8, %v3056_v5, %v2858_v40  ;;  %v4122_v5 = vld [vmem:[%s4399_s20 + $0x28] sm:$0x3] }
 0x261   : > { %v3089_v19 = vsel %vm3076_vm6, %v3072_v42, %v2904_v59 }
 0x263   : > { %v2718_v49 = vpop.permute.xlu0 %2717 }
 0x264   : > { %v2764_v30 = vpop.permute.xlu1 %2763  ;;  %v3025_v17 = vsel %vm3009_vm14, %v3008_v48, %v2718_v49 }
 0x265   : > { %v3040_v28 = vsel %vm1170_vm1, %v3024_v54, %v2764_v30 }
 0x267   : > { %v2906_v62 = vpop.permute.xlu0 %2905 }
 0x268   : > { %v2952_v51 = vpop.permute.xlu1 %2951  ;;  %v3090_v37 = vsel %vm3076_vm6, %v3073_v50, %v2906_v62 }
 0x269   : > { %v3106_v57 = vsel %vm3093_vm11, %v3089_v19, %v2952_v51 }
 0x26a   : > { %3981 = vmatprep.mubr.msk.f32.mxu1 %vm3122_vm2, %v3106_v57 }
 0x26b   : > { %v2766_v31 = vpop.permute.xlu0 %2765 }
 0x26c   : > { %v2812_v12 = vpop.permute.xlu1 %2811  ;;  %v3041_v56 = vsel %vm1170_vm1, %v3025_v17, %v2766_v31 }
 0x26d   : > { %v3057_v63 = vsel %vm3042_vm5, %v3040_v28, %v2812_v12  ;;  %v4121_v12 = vld [vmem:[%s4399_s20 + $0x20] sm:$0xff] }
 0x26e   : > { %v3074_v33 = vsel %vm3059_vm8, %v3057_v63, %v5246_v53  ;;  %v3541_v21 = vrot.slane %v4121_v12, 1  ;;  %v3543_v63 = vrot.slane %v4122_v5, 1 }
 0x26f   : > { %v2954_v23 = vpop.permute.xlu0 %2953  ;;  %v3091_v53 = vsel %vm3076_vm6, %v3074_v33, %v5253_v45 }
 0x270   : > { %v3107_v58 = vsel %vm3093_vm11, %v3090_v37, %v2954_v23  ;;  %v2814_v41 = vpop.permute.xlu1 %2813  ;;  %v5729_v37 = vld [vmem:[%s5894_s6] ss:$0 sm:$0xff]  ;;  %v4123_v23 = vld [vmem:[%s4399_s20 + $0x18] sm:$0xff] }
 0x271   : > { %v3058_v8 = vsel %vm3042_vm5, %v3041_v56, %v2814_v41  ;;  %3982 = vmatmul.mubr.msk.f32.gmra.mxu1 %vm3122_vm2, %v3107_v58  ;;  %v3540_v56 = vrot.slane %v4123_v23, 1  ;;  %v3544_v41 = vsel %vm2483_vm15, %v3541_v21, %v3543_v63  ;;  %v4133_v23 = vld [vmem:[%s4399_s20 + $0x80] sm:$0xff] }
 0x272   : > { %v3965_v22 = vpop.f32.mrf.mxu1  ;;  %v3075_v35 = vsel %vm3059_vm8, %v3058_v8, %v5248_v43 }
 0x273   : > { %v2956_v38 = vpop.permute.xlu0 %2955  ;;  %v3092_v32 = vsel %vm3076_vm6, %v3075_v35, %v5255_v20  ;;  %v3247_v0 = vadd.f32 %v3965_v22, %v5683_v52 }
 0x274   : > { %v3241_v27 = vpop.f32.mrf.mxu1  ;;  %v3108_v7 = vsel %vm3093_vm11, %v3091_v53, %v2956_v38  ;;  %v2958_v15 = vpop.permute.xlu1 %2957  ;;  %v3542_v53 = vsel %vm2483_vm15, %v3540_v56, %v3541_v21  ;;  %v3561_v56 = vrot.slane %v4133_v23, 1 }
 0x275   : > { %v3242_v46 = vadd.f32 %v5683_v52, %v3241_v27  ;;  %v3109_v29 = vsel %vm3093_vm11, %v3092_v32, %v2958_v15  ;;  %3984 = vmatprep.mubr.msk.f32.mxu1 %vm3122_vm2, %v3108_v7  ;;  %v3321_v6 = vmax.f32 %v3247_v0, 0.0 }
 0x276   : > { %3985 = vmatmul.mubr.msk.f32.gmra.mxu1 %vm3122_vm2, %v3109_v29  ;;  %v4125_v29 = vld [vmem:[%s4399_s20 + $0x40] sm:$0x3] }
 0x277   : > { %v3320_v43 = vmax.f32 %v3242_v46, 0.0  ;;  %v4124_v46 = vld [vmem:[%s4399_s20 + $0x38] sm:$0xff] }
 0x278   : > { %v3546_v15 = vrot.slane %v4124_v46, 1 }
 0x279   : > { %3989 = vmatprep.mubr.msk.f32.mxu1 %vm2975_vm12, %v3320_v43  ;;  %v3548_v43 = vrot.slane %v4125_v29, 1 }
 0x27a   : > { %3990 = vmatmul.mubr.msk.f32.vlgmr.msra.gmra.mxu1 %vm2975_vm12, %v3321_v6  ;;  %v4126_v6 = vld [vmem:[%s4399_s20 + $0x30] sm:$0xff] }
 0x292   : > { %v3968_v45 = vpop.f32.mrf.mxu1 }
 0x293   : > { %v3257_v20 = vadd.f32 %v3968_v45, %v5683_v52  ;;  %v3545_v45 = vrot.slane %v4126_v6, 1 }
 0x294   : > { %v3251_v3 = vpop.f32.mrf.mxu1 }
 0x295   : > { %v3252_v16 = vadd.f32 %v5683_v52, %v3251_v3  ;;  %v3323_v55 = vmax.f32 %v3257_v20, 0.0  ;;  %v3549_v3 = vsel %vm2483_vm15, %v3546_v15, %v3548_v43  ;;  %v4137_v43 = vld [vmem:[%s4399_s20 + $0xa0] sm:$0x3] }
 0x296   : > { %v3568_v6 = vrot.slane %v4137_v43, 1 }
 0x297   : > { %v3322_v25 = vmax.f32 %v3252_v16, 0.0 }
 0x299   : > { %3992 = vmatprep.mubr.msk.f32.mxu1 %vm2975_vm12, %v3322_v25 }
 0x29a   : > { %3993 = vmatmul.mubr.msk.f32.gmra.mxu1 %vm2975_vm12, %v3323_v55  ;;  %v3547_v55 = vsel %vm2483_vm15, %v3545_v45, %v3546_v15  ;;  %v4136_v15 = vld [vmem:[%s4399_s20 + $0x98] sm:$0xff]  ;;  %v4138_v45 = vld [vmem:[%s4399_s20 + $0x90] sm:$0xff] }
 0x29b   : > { %v3566_v29 = vrot.slane %v4136_v15, 1 }
 0x2b2   : > { %v3971_v14 = vpop.f32.mrf.mxu1 }
 0x2b3   : > { %v3267_v18 = vadd.f32 %v3971_v14, %v5683_v52 }
 0x2b4   : > { %v3261_v13 = vpop.f32.mrf.mxu1 }
 0x2b5   : > { %v3262_v26 = vadd.f32 %v5683_v52, %v3261_v13  ;;  %v3325_v9 = vmax.f32 %v3267_v18, 0.0 }
 0x2b7   : > { %v3324_v34 = vmax.f32 %v3262_v26, 0.0 }
 0x2b9   : > { %3995 = vmatprep.mubr.msk.f32.mxu1 %vm2975_vm12, %v3324_v34 }
 0x2ba   : > { %3996 = vmatmul.mubr.msk.f32.gmra.mxu1 %vm2975_vm12, %v3325_v9  ;;  %v4127_v9 = vld [vmem:[%s4399_s20 + $0x50] sm:$0xff] }
 0x2d2   : > { %v3974_v61 = vpop.f32.mrf.mxu1 }
 0x2d3   : > { %v3277_v40 = vadd.f32 %v3974_v61, %v5683_v52  ;;  %v3551_v61 = vrot.slane %v4127_v9, 1 }
 0x2d4   : > { %v3271_v59 = vpop.f32.mrf.mxu1 }
 0x2d5   : > { %v3272_v36 = vadd.f32 %v5683_v52, %v3271_v59  ;;  %v3327_v49 = vmax.f32 %v3277_v40, 0.0  ;;  %v4128_v40 = vld [vmem:[%s4399_s20 + $0x58] sm:$0x3] }
 0x2d6   : > { %v3553_v59 = vrot.slane %v4128_v40, 1 }
 0x2d7   : > { %v3326_v39 = vmax.f32 %v3272_v36, 0.0  ;;  %v4129_v36 = vld [vmem:[%s4399_s20 + $0x48] sm:$0xff] }
 0x2d9   : > { %3998 = vmatprep.mubr.msk.f32.mxu1 %vm2975_vm12, %v3326_v39  ;;  %v3550_v39 = vrot.slane %v4129_v36, 1 }
 0x2da   : > { %3999 = vmatmul.mubr.msk.f32.gmra.mxu1 %vm2975_vm12, %v3327_v49 }
 0x2f2   : > { %v3977_v44 = vpop.f32.mrf.mxu1 }
 0x2f3   : > { %v3287_v30 = vadd.f32 %v3977_v44, %v5683_v52  ;;  %v3554_v44 = vsel %vm2483_vm15, %v3551_v61, %v3553_v59  ;;  %v4140_v59 = vld [vmem:[%s4399_s20 + $0xb8] sm:$0x3] }
 0x2f4   : > { %v3281_v2 = vpop.f32.mrf.mxu1  ;;  %v3573_v36 = vrot.slane %v4140_v59, 1 }
 0x2f5   : > { %v3282_v4 = vadd.f32 %v5683_v52, %v3281_v2  ;;  %v3329_v62 = vmax.f32 %v3287_v30, 0.0 }
 0x2f7   : > { %v3328_v42 = vmax.f32 %v3282_v4, 0.0  ;;  %v3552_v4 = vsel %vm2483_vm15, %v3550_v39, %v3551_v61  ;;  %v4139_v61 = vld [vmem:[%s4399_s20 + $0xb0] sm:$0xff]  ;;  %v4141_v39 = vld [vmem:[%s4399_s20 + $0xa8] sm:$0xff] }
 0x2f8   : > { %v3571_v40 = vrot.slane %v4139_v61, 1 }
 0x2f9   : > { %4001 = vmatprep.mubr.msk.f32.mxu1 %vm2975_vm12, %v3328_v42 }
 0x2fa   : > { %4002 = vmatmul.mubr.msk.f32.gmra.mxu1 %vm2975_vm12, %v3329_v62 }
 0x312   : > { %v3980_v19 = vpop.f32.mrf.mxu1 }
 0x313   : > { %v3297_v51 = vadd.f32 %v3980_v19, %v5683_v52 }
 0x314   : > { %v3291_v1 = vpop.f32.mrf.mxu1 }
 0x315   : > { %v3292_v24 = vadd.f32 %v5683_v52, %v3291_v1  ;;  %v3331_v60 = vmax.f32 %v3297_v51, 0.0 }
 0x317   : > { %v3330_v57 = vmax.f32 %v3292_v24, 0.0  ;;  %v4130_v24 = vld [vmem:[%s4399_s20 + $0x68] sm:$0xff] }
 0x319   : > { %4004 = vmatprep.mubr.msk.f32.mxu1 %vm2975_vm12, %v3330_v57  ;;  %v3556_v57 = vrot.slane %v4130_v24, 1 }
 0x31a   : > { %4005 = vmatmul.mubr.msk.f32.gmra.mxu1 %vm2975_vm12, %v3331_v60  ;;  %v4131_v60 = vld [vmem:[%s4399_s20 + $0x70] sm:$0x3] }
 0x331   : > { %v3983_v11 = vpop.f32.mrf.mxu1 }
 0x332   : > { %v3307_v10 = vadd.f32 %v3983_v11, %v5683_v52  ;;  %v3558_v11 = vrot.slane %v4131_v60, 1  ;;  %v4144_v60 = vld [vmem:[%s4399_s20 + $0xc0] sm:$0xff] }
 0x333   : > { %v3301_v54 = vpop.f32.mrf.mxu1 }
 0x334   : > { %v3302_v31 = vadd.f32 %v5683_v52, %v3301_v54  ;;  %v3333_v48 = vmax.f32 %v3307_v10, 0.0  ;;  %v4132_v10 = vld [vmem:[%s4399_s20 + $0x60] sm:$0xff] }
 0x335   : > { %v3555_v54 = vrot.slane %v4132_v10, 1 }
 0x336   : > { %v3332_v47 = vmax.f32 %v3302_v31, 0.0  ;;  %v3986_v28 = vpop.f32.mrf.mxu1 }
 0x337   : > { %v3317_v50 = vadd.f32 %v3986_v28, %v5683_v52  ;;  %v3557_v21 = vsel %vm2483_vm15, %v3555_v54, %v3556_v57 }
 0x338   : > { %v3311_v17 = vpop.f32.mrf.mxu1  ;;  %4007 = vmatprep.mubr.msk.f32.mxu1 %vm2975_vm12, %v3332_v47  ;;  %v3559_v47 = vsel %vm2483_vm15, %v3556_v57, %v3558_v11  ;;  %v3575_v11 = vrot.slane %v4144_v60, 1 }
 0x339   : > { %v3312_v33 = vadd.f32 %v5683_v52, %v3311_v17  ;;  %4008 = vmatmul.mubr.msk.f32.gmra.mxu1 %vm2975_vm12, %v3333_v48  ;;  %v3335_v35 = vmax.f32 %v3317_v50, 0.0 }
 0x33a   : > { %v3991_v58 = vpop.f32.mrf.mxu1 }
 0x33b   : > { %v3334_v8 = vmax.f32 %v3312_v33, 0.0  ;;  %v3467_v22 = vadd.f32 %v3991_v58, %v5729_v37  ;;  %v4134_v33 = vld [vmem:[%s4399_s20 + $0x88] sm:$0x3] }
 0x33c   : > { %v3461_v38 = vpop.f32.mrf.mxu1  ;;  %v3563_v58 = vrot.slane %v4134_v33, 1 }
 0x33d   : > { %v3597_v27 = vadd.f32 %v3544_v41, %v3467_v22  ;;  %v3462_v52 = vadd.f32 %v5729_v37, %v3461_v38  ;;  %4010 = vmatprep.mubr.msk.f32.mxu1 %vm2975_vm12, %v3334_v8  ;;  %v4135_v41 = vld [vmem:[%s4399_s20 + $0x78] sm:$0xff] }
 0x33e   : > { %4011 = vmatmul.mubr.msk.f32.gmra.mxu1 %vm2975_vm12, %v3335_v35  ;;  %v3560_v8 = vrot.slane %v4135_v41, 1  ;;  %v3564_v35 = vsel %vm2483_vm15, %v3561_v56, %v3563_v58 }
 0x33f   : > { %v3613_v32 = vmax.f32 %v3597_v27, 0.0  ;;  %v3596_v0 = vadd.f32 %v3542_v53, %v3462_v52 }
 0x340   : > { %v3562_v27 = vsel %vm2483_vm15, %v3560_v8, %v3561_v56 }
 0x341   : > { %3629 = vst.msk [vmem:[%s5742_s28 + $0x8] sm:$0xff] %vm1170_vm1, %v3613_v32  ;;  %v3612_v7 = vmax.f32 %v3596_v0, 0.0 }
 0x343   : > { %3628 = vst.msk [vmem:[%s5742_s28] sm:$0xff] %vm1170_vm1, %v3612_v7 }
 0x35a   : > { %v3994_v20 = vpop.f32.mrf.mxu1 }
 0x35b   : > { %v3477_v16 = vadd.f32 %v3994_v20, %v5729_v37  ;;  %v3565_v20 = vrot.slane %v4138_v45, 1 }
 0x35c   : > { %v3471_v25 = vpop.f32.mrf.mxu1 }
 0x35d   : > { %v3599_v14 = vadd.f32 %v3549_v3, %v3477_v16  ;;  %v3472_v18 = vadd.f32 %v5729_v37, %v3471_v25  ;;  %v3569_v16 = vsel %vm2483_vm15, %v3566_v29, %v3568_v6 }
 0x35f   : > { %v3615_v13 = vmax.f32 %v3599_v14, 0.0  ;;  %v3598_v26 = vadd.f32 %v3547_v55, %v3472_v18  ;;  %v3567_v14 = vsel %vm2483_vm15, %v3565_v20, %v3566_v29 }
 0x361   : > { %3631 = vst.msk [vmem:[%s5742_s28 + $0x18] sm:$0xff] %vm1170_vm1, %v3615_v13  ;;  %v3614_v34 = vmax.f32 %v3598_v26, 0.0 }
 0x363   : > { %3630 = vst.msk [vmem:[%s5742_s28 + $0x10] sm:$0xff] %vm1170_vm1, %v3614_v34 }
 0x37a   : > { %v3997_v49 = vpop.f32.mrf.mxu1 }
 0x37b   : > { %v3487_v30 = vadd.f32 %v3997_v49, %v5729_v37  ;;  %v3570_v49 = vrot.slane %v4141_v39, 1 }
 0x37c   : > { %v3481_v2 = vpop.f32.mrf.mxu1 }
 0x37d   : > { %v3601_v42 = vadd.f32 %v3554_v44, %v3487_v30  ;;  %v3482_v62 = vadd.f32 %v5729_v37, %v3481_v2  ;;  %v3574_v30 = vsel %vm2483_vm15, %v3571_v40, %v3573_v36 }
 0x37f   : > { %v3617_v19 = vmax.f32 %v3601_v42, 0.0  ;;  %v3600_v51 = vadd.f32 %v3552_v4, %v3482_v62  ;;  %v4142_v4 = vld [vmem:[%s4399_s20 + $0xc8] sm:$0xff]  ;;  %v4143_v62 = vld [vmem:[%s4399_s20 + $0xd0] sm:$0x3]  ;;  %s3816_s20 = sshll.u32 %s4381_s14, 11  ;;  %s5836_s14 = scalar_lea.sflag [#allocation3], %s295_s18 }
 0x380   : > { %v3576_v42 = vrot.slane %v4142_v4, 1  ;;  %s5826_s17 = scalar_lea.hbm %s5895_s7, %s3816_s20  ;;  %s4159_s20 = scalar_lea.vmem %s4158_s9, 4096 }
 0x381   : > { %3633 = vst.msk [vmem:[%s5742_s28 + $0x28] sm:$0xff] %vm1170_vm1, %v3617_v19  ;;  %v3616_v1 = vmax.f32 %v3600_v51, 0.0  ;;  %v3578_v19 = vrot.slane %v4143_v62, 1  ;;  %p4161_p3 = scmp.lt.s32.totalorder %s4159_s20, %s4153_s22 }
 0x383   : > { %3632 = vst.msk [vmem:[%s5742_s28 + $0x20] sm:$0xff] %vm1170_vm1, %v3616_v1  ;;  %v3572_v1 = vsel %vm2483_vm15, %v3570_v49, %v3571_v40  ;;  %p4162_p4 = por %p4161_p3, %p4160_p2 }
 0x385   : > { %p4163_p6 = pnand %p4162_p4, %p4156_p1 }
 0x39a   : > { %v4000_v31 = vpop.f32.mrf.mxu1 }
 0x39b   : > { %v3497_v28 = vadd.f32 %v4000_v31, %v5729_v37 }
 0x39c   : > { %v3491_v12 = vpop.f32.mrf.mxu1 }
 0x39d   : > { %v3603_v5 = vadd.f32 %v3559_v47, %v3497_v28  ;;  %v3492_v63 = vadd.f32 %v5729_v37, %v3491_v12  ;;  %v3579_v47 = vsel %vm2483_vm15, %v3576_v42, %v3578_v19 }
 0x39f   : > { %v3619_v48 = vmax.f32 %v3603_v5, 0.0  ;;  %v3602_v50 = vadd.f32 %v3557_v21, %v3492_v63  ;;  %v3577_v5 = vsel %vm2483_vm15, %v3575_v11, %v3576_v42 }
 0x3a1   : > { %3635 = vst.msk [vmem:[%s5742_s28 + $0x38] sm:$0xff] %vm1170_vm1, %v3619_v48  ;;  %v3618_v17 = vmax.f32 %v3602_v50, 0.0 }
 0x3a3   : > { %3634 = vst.msk [vmem:[%s5742_s28 + $0x30] sm:$0xff] %vm1170_vm1, %v3618_v17 }
 0x3ba   : > { %v4003_v22 = vpop.f32.mrf.mxu1 }
 0x3bb   : > { %v3507_v38 = vadd.f32 %v4003_v22, %v5729_v37 }
 0x3bc   : > { %v3501_v53 = vpop.f32.mrf.mxu1 }
 0x3bd   : > { %v3605_v52 = vadd.f32 %v3564_v35, %v3507_v38  ;;  %v3502_v32 = vadd.f32 %v5729_v37, %v3501_v53 }
 0x3bf   : > { %v3621_v0 = vmax.f32 %v3605_v52, 0.0  ;;  %v3604_v7 = vadd.f32 %v3562_v27, %v3502_v32 }
 0x3c1   : > { %3637 = vst.msk [vmem:[%s5742_s28 + $0x48] sm:$0xff] %vm1170_vm1, %v3621_v0  ;;  %v3620_v46 = vmax.f32 %v3604_v7, 0.0 }
 0x3c3   : > { %3636 = vst.msk [vmem:[%s5742_s28 + $0x40] sm:$0xff] %vm1170_vm1, %v3620_v46 }
 0x3da   : > { %v4006_v3 = vpop.f32.mrf.mxu1 }
 0x3db   : > { %v3517_v25 = vadd.f32 %v4006_v3, %v5729_v37 }
 0x3dc   : > { %v3511_v55 = vpop.f32.mrf.mxu1 }
 0x3dd   : > { %v3607_v18 = vadd.f32 %v3569_v16, %v3517_v25  ;;  %v3512_v13 = vadd.f32 %v5729_v37, %v3511_v55 }
 0x3df   : > { %v3623_v26 = vmax.f32 %v3607_v18, 0.0  ;;  %v3606_v34 = vadd.f32 %v3567_v14, %v3512_v13 }
 0x3e1   : > { %3639 = vst.msk [vmem:[%s5742_s28 + $0x58] sm:$0xff] %vm1170_vm1, %v3623_v26  ;;  %v3622_v9 = vmax.f32 %v3606_v34, 0.0 }
 0x3e3   : > { %3638 = vst.msk [vmem:[%s5742_s28 + $0x50] sm:$0xff] %vm1170_vm1, %v3622_v9 }
 0x3f9   : > { %v4009_v44 = vpop.f32.mrf.mxu1 }
 0x3fa   : > { %v3527_v2 = vadd.f32 %v4009_v44, %v5729_v37 }
 0x3fb   : > { %v3521_v51 = vpop.f32.mrf.mxu1 }
 0x3fc   : > { %v3609_v24 = vadd.f32 %v3574_v30, %v3527_v2  ;;  %v3522_v57 = vadd.f32 %v5729_v37, %v3521_v51 }
 0x3fe   : > { %v3625_v10 = vmax.f32 %v3609_v24, 0.0  ;;  %v3608_v54 = vadd.f32 %v3572_v1, %v3522_v57  ;;  %v4012_v31 = vpop.f32.mrf.mxu1 }
 0x3ff   : > { %v3537_v28 = vadd.f32 %v4012_v31, %v5729_v37 }
 0x400   : > { %3641 = vst.msk [vmem:[%s5742_s28 + $0x68] sm:$0xff] %vm1170_vm1, %v3625_v10  ;;  %v3624_v12 = vmax.f32 %v3608_v54, 0.0  ;;  %v3531_v21 = vpop.f32.mrf.mxu1 }
 0x401   : > { %v3611_v63 = vadd.f32 %v3579_v47, %v3537_v28  ;;  %v3532_v48 = vadd.f32 %v5729_v37, %v3531_v21 }
 0x402   : > { %3640 = vst.msk [vmem:[%s5742_s28 + $0x60] sm:$0xff] %vm1170_vm1, %v3624_v12 }
 0x403   : > { %v3627_v50 = vmax.f32 %v3611_v63, 0.0  ;;  %v3610_v17 = vadd.f32 %v3577_v5, %v3532_v48 }
 0x405   : > { %3643 = vst.msk [vmem:[%s5742_s28 + $0x78] sm:$0xff] %vm1170_vm1, %v3627_v50  ;;  %v3626_v23 = vmax.f32 %v3610_v17, 0.0 }
 0x407   : > { %3642 = vst.msk [vmem:[%s5742_s28 + $0x70] sm:$0xff] %vm1170_vm1, %v3626_v23 }
 0x408   : > { %4166 = shalt.err (!%p4163_p6)
}
 0x409   : > { %s4167_s18 = scalar_lea.hbm %s5826_s17, 2048  ;;  %s4171_s12 = scalar_lea.hbm %s5895_s7, 8192 }
 0x40a   : > { %p4168_p8 = scmp.ne.s32.totalorder %s5826_s17, %s4167_s18  ;;  %p4172_p11 = scmp.lt.s32.totalorder %s5826_s17, %s5895_s7 }
 0x40b   : > { %p4173_p12 = scmp.lt.s32.totalorder %s4171_s12, %s4167_s18 }
 0x40c   : > { %p4169_p9 = pnand %p4168_p8, %p4353_p5 }
 0x40d   : > { %p4174_p13 = por %p4173_p12, %p4172_p11 }
 0x40e   : > { %p4170_p10 = pneg %p4169_p9 }
 0x410   : > { %p4175_p0 = pnand %p4174_p13, %p4170_p10 }
 0x412   : > { %4178 = shalt.err (!%p4175_p0)
}
 0x413   : > { %s4259_s22 = smov 128  }
 0x414   : > { %4018 = dma.vmem_to_hbm [thread:$0]  (%p4353_p5), %s5830_s27, 2048, %s5826_s17, %s5836_s14, %s4259_s22, %s4259_s22, %s5932_s19  }
 0x415 PF: > { %p4024_p1 = scmp.ge.s32.totalorder %s4245_s8, 2  ;;  %s3675_s9 = sand.u32 1, %s4217_s24  }
 0x416   : > { %s3676_s0 = scalar_lea.sflag [#allocation3], %s3675_s9 }
 0x417   : > { %p4021_p2 = pnand %p4024_p1, %p4359_p7 }
 0x419   : > { %p4022_p3 = pneg %p4021_p2 }
 0x41b   : > { %4212 = dma.done.wait (%p4022_p3), %s3676_s0, 2048  }
 0x41c   : > { %4214 = vsyncadd (%p4022_p3), %s3676_s0, 4294965248  ;;  %s20_s8 = sadd.s32 1, %s4245_s8   ;;  %s5940_s24 = smov %s4221_s25 }
 0x41d   : > { %p17_p4 = scmp.ge.s32.totalorder %s20_s8, 6   ;;  %s5941_s25 = smov %s4225_s26 }
 0x41e   : > { %s5942_s26 = smov %s4369_s21  ;;  %s5943_s27 = smov %s4237_s29 }
 0x41f   : > { %s5944_s28 = smov %s4241_s30  ;;  %s5945_s29 = smov %s5948_s10 }
 0x420   : > { %s5946_s30 = smov %s5952_s11  ;;  %19 = sbr.rel (!%p17_p4) target bundleno = 7 (0x7), region = 83 }
 0x425   :  { %3681 = vsyncpa [#allocation3], 1 }
 0x426   :  { %3683 = vsyncpa [#allocation3 + $0x1], 1 }

</bundles_post_ra>
